<compile_context>
chip_gen: v5e
topology: v5e:2x2
jax: 0.10.0
libtpu: 0.0.40
codegen_flags: <defaults>
</compile_context>

<pallas_src>
import functools

import jax
import jax.numpy as jnp
from jax import lax
from jax.experimental import pallas as pl
from jax.experimental.pallas import tpu as pltpu


# ----------------------------------------------------------------------------
# Fused Pallas kernel: all GCN layers + log_softmax in one pallas_call.
# ----------------------------------------------------------------------------
def _fused_gcn_kernel(*refs, n_layers):
    # refs layout: x, adj, (w_0, b_0, ..., w_{L-1}, b_{L-1}), out
    x_ref, a_ref = refs[0], refs[1]
    out_ref = refs[-1]
    wb_refs = refs[2:-1]
    mm_dtype = a_ref.dtype  # matmul operand dtype (bf16)

    # Symmetric normalization folded into the kernel.  adj holds 0/1 entries
    # (exact in bf16); degrees include the self-loop (+1), so deg >= 1.
    deg = jnp.sum(a_ref[...].astype(jnp.float32), axis=1, keepdims=True) + 1.0
    d_inv_sqrt = lax.rsqrt(deg)                      # (N, 1) f32

    def propagate(v_f32):
        # A_hat @ v  ==  d_inv_sqrt * ((A @ (d_inv_sqrt*v)) + d_inv_sqrt*v)
        # A read at point of use; bf16 operands, f32 MXU accumulation; the
        # identity (self-loop) term is added in f32.
        u = d_inv_sqrt * v_f32
        av = jnp.dot(a_ref[...], u.astype(mm_dtype),
                     preferred_element_type=jnp.float32)
        return d_inv_sqrt * (av + u)

    h = x_ref[...].astype(jnp.float32)               # activations carried in f32

    for l in range(n_layers):                        # static -> unrolled
        w_ref = wb_refs[2 * l]                       # (Fin, Fout) bf16
        b_ref = wb_refs[2 * l + 1]                   # (1, Fout)   f32
        fin, fout = w_ref.shape                      # static Python ints
        b = b_ref[...]

        if fin < fout:
            # (A_hat @ H) @ W : fewer MACs when Fin < Fout.
            s = propagate(h)
            z = jnp.dot(s.astype(mm_dtype), w_ref[...],
                        preferred_element_type=jnp.float32) + b
        else:
            # A_hat @ (H @ W) : fewer MACs when Fout <= Fin.
            hw = jnp.dot(h.astype(mm_dtype), w_ref[...],
                         preferred_element_type=jnp.float32)
            z = propagate(hw) + b

        if l < n_layers - 1:
            h = jnp.maximum(z, 0.0)                  # ReLU; dropout = identity
        else:
            # log_softmax over the class (lane) axis, all f32 / EUP.
            m = jnp.max(z, axis=-1, keepdims=True)
            zz = z - m
            lse = jnp.log(jnp.sum(jnp.exp(zz), axis=-1, keepdims=True))
            out_ref[...] = (zz - lse).astype(out_ref.dtype)


def gcn_forward(x, adj, params, *, use_bf16=True, out_dtype=jnp.float32):
    """params: list of (W, b) per GCNConv layer; W: (in, out), b: (out,).

    `adj` is the raw 0/1 adjacency WITHOUT self-loops; normalization
    (add self-loops + D^{-1/2} scaling) happens inside the kernel.
    """
    n_layers = len(params)
    n_nodes = x.shape[0]
    nclass = params[-1][0].shape[1]
    mm_dtype = jnp.bfloat16 if use_bf16 else jnp.float32

    inputs = [x.astype(jnp.float32), adj.astype(mm_dtype)]
    for w, b in params:
        inputs.append(w.astype(mm_dtype))
        inputs.append(b.reshape(1, -1).astype(jnp.float32))

    # No grid: whole problem lives in VMEM, single-buffered (no dead prefetch).
    in_specs = [pl.BlockSpec(memory_space=pltpu.MemorySpace.VMEM)
                for _ in inputs]
    out_spec = pl.BlockSpec(memory_space=pltpu.MemorySpace.VMEM)

    return pl.pallas_call(
        functools.partial(_fused_gcn_kernel, n_layers=n_layers),
        out_shape=jax.ShapeDtypeStruct((n_nodes, nclass), out_dtype),
        in_specs=in_specs,
        out_specs=out_spec,
        compiler_params=pltpu.CompilerParams(
            vmem_limit_bytes=32 * 1024 * 1024,
        ),
    )(*inputs)


# ----------------------------------------------------------------------------
# Pure-JAX references.
# ----------------------------------------------------------------------------
def _normalize_adj(adj):
    """A_hat = D^{-1/2} (A + I) D^{-1/2}   (GCNConv normalize=True)."""
    n = adj.shape[0]
    a = adj + jnp.eye(n, dtype=adj.dtype)
    deg = jnp.sum(a, axis=1)
    dis = jnp.where(deg > 0, 1.0 / jnp.sqrt(deg), 0.0)
    return a * dis[:, None] * dis[None, :]


def gcn_forward_ref_f32(x, adj, params):
    """True f32 GCN forward (PyTorch-equivalent semantics)."""
    a_hat = _normalize_adj(adj)
    h = x
    for li, (w, b) in enumerate(params):
        z = a_hat @ (h @ w) + b[None, :]
        if li < len(params) - 1:
            h = jnp.maximum(z, 0.0)
        else:
            return jax.nn.log_softmax(z, axis=-1)


def gcn_forward_ref_matched(x, adj, params, *, use_bf16=True):
    """Mirrors the kernel's bf16-operand / f32-accumulate / folded-norm recipe."""
    mm_dtype = jnp.bfloat16 if use_bf16 else jnp.float32
    a = adj.astype(mm_dtype)
    deg = jnp.sum(a.astype(jnp.float32), axis=1, keepdims=True) + 1.0
    dis = lax.rsqrt(deg)

    def propagate(v):
        u = dis * v
        av = jnp.dot(a, u.astype(mm_dtype), preferred_element_type=jnp.float32)
        return dis * (av + u)

    h = x.astype(jnp.float32)
    for li, (w, b) in enumerate(params):
        fin, fout = w.shape
        wq = w.astype(mm_dtype)
        bq = b.reshape(1, -1).astype(jnp.float32)
        if fin < fout:
            z = jnp.dot(propagate(h).astype(mm_dtype), wq,
                        preferred_element_type=jnp.float32) + bq
        else:
            hw = jnp.dot(h.astype(mm_dtype), wq,
                         preferred_element_type=jnp.float32)
            z = propagate(hw) + bq
        if li < len(params) - 1:
            h = jnp.maximum(z, 0.0)
        else:
            return jax.nn.log_softmax(z, axis=-1)


def _glorot(key, fan_in, fan_out):
    limit = jnp.sqrt(6.0 / (fan_in + fan_out))
    return jax.random.uniform(key, (fan_in, fan_out), jnp.float32, -limit, limit)


def init_gcn_params(key, nfeat, nhid, nclass, num_layers):
    dims = [nfeat] + [nhid] * (num_layers - 1) + [nclass]
    params = []
    for li in range(num_layers):
        key, wk = jax.random.split(key)
        w = _glorot(wk, dims[li], dims[li + 1])
        b = jnp.zeros((dims[li + 1],), jnp.float32)   # GCNConv bias init: zeros
        params.append((w, b))
    return params


# ----------------------------------------------------------------------------
if __name__ == "__main__":
    key = jax.random.PRNGKey(0)

    # Small synthetic graph: 128 nodes, 64 input features, 128 hidden, 16 classes.
    n_nodes, nfeat, nhid, nclass, num_layers = 128, 64, 128, 16, 3

    kx, ka, kp = jax.random.split(key, 3)
    x = jax.random.normal(kx, (n_nodes, nfeat), jnp.float32)

    # Random symmetric 0/1 adjacency, no self-loops (kernel adds them).
    a_raw = (jax.random.uniform(ka, (n_nodes, n_nodes)) < 0.05).astype(jnp.float32)
    adj = jnp.clip(a_raw + a_raw.T, 0.0, 1.0)
    adj = adj * (1.0 - jnp.eye(n_nodes, dtype=jnp.float32))

    params = init_gcn_params(kp, nfeat, nhid, nclass, num_layers)

    out = gcn_forward(x, adj, params)
    out = jax.block_until_ready(out)

    # Sanity: shape, finiteness, softmax rows sum to ~1.
    assert out.shape == (n_nodes, nclass)
    assert bool(jnp.all(jnp.isfinite(out)))
    row_sums = jnp.exp(out).sum(axis=-1)
    assert bool(jnp.all(jnp.abs(row_sums - 1.0) < 1e-4))

    # Matches the same-recipe JAX reference tightly ...
    ref_m = gcn_forward_ref_matched(x, adj, params)
    assert bool(jnp.max(jnp.abs(out - ref_m)) < 1e-2)

    # ... and the true f32 GCN semantics within bf16-matmul tolerance.
    ref_f32 = gcn_forward_ref_f32(x, adj, params)
    assert bool(jnp.max(jnp.abs(out - ref_f32)) < 1e-1)

    print("KERNEL_OK")
</pallas_src>

<mosaic_0001>
module attributes {stable_mosaic.version = 11 : i64} {
  func.func @_fused_gcn_kernel(%arg0: memref<128x64xf32, #tpu.memory_space<vmem>>, %arg1: memref<128x128xbf16, #tpu.memory_space<vmem>>, %arg2: memref<64x128xbf16, #tpu.memory_space<vmem>>, %arg3: memref<1x128xf32, #tpu.memory_space<vmem>>, %arg4: memref<128x128xbf16, #tpu.memory_space<vmem>>, %arg5: memref<1x128xf32, #tpu.memory_space<vmem>>, %arg6: memref<128x16xbf16, #tpu.memory_space<vmem>>, %arg7: memref<1x16xf32, #tpu.memory_space<vmem>>, %arg8: memref<128x16xf32, #tpu.memory_space<vmem>>) attributes {dimension_semantics = [], scalar_prefetch = 0 : i64, scratch_operands = 0 : i64, tpu.core_type = #tpu.core_type<tc>} {
    %c0 = arith.constant 0 : index
    %c0_0 = arith.constant 0 : index
    %0 = vector.load %arg1[%c0, %c0_0] : memref<128x128xbf16, #tpu.memory_space<vmem>>, vector<128x128xbf16>
    %1 = arith.extf %0 : vector<128x128xbf16> to vector<128x128xf32>
    %cst = arith.constant dense<0.000000e+00> : vector<128xf32>
    %2 = vector.multi_reduction <add>, %1, %cst [1] : vector<128x128xf32> to vector<128xf32>
    %3 = vector.shape_cast %2 : vector<128xf32> to vector<128x1xf32>
    %cst_1 = arith.constant 1.000000e+00 : f32
    %4 = vector.broadcast %cst_1 : f32 to vector<128x1xf32>
    %5 = arith.addf %3, %4 : vector<128x1xf32>
    %6 = math.rsqrt %5 : vector<128x1xf32>
    %c0_2 = arith.constant 0 : index
    %c0_3 = arith.constant 0 : index
    %7 = vector.load %arg0[%c0_2, %c0_3] : memref<128x64xf32, #tpu.memory_space<vmem>>, vector<128x64xf32>
    %c0_4 = arith.constant 0 : index
    %c0_5 = arith.constant 0 : index
    %8 = vector.load %arg3[%c0_4, %c0_5] : memref<1x128xf32, #tpu.memory_space<vmem>>, vector<1x128xf32>
    %9 = vector.broadcast %6 : vector<128x1xf32> to vector<128x64xf32>
    %10 = arith.mulf %9, %7 : vector<128x64xf32>
    %c0_6 = arith.constant 0 : index
    %c0_7 = arith.constant 0 : index
    %11 = vector.load %arg1[%c0_6, %c0_7] : memref<128x128xbf16, #tpu.memory_space<vmem>>, vector<128x128xbf16>
    %12 = arith.truncf %10 : vector<128x64xf32> to vector<128x64xbf16>
    %cst_8 = arith.constant dense<0.000000e+00> : vector<128x64xf32>
    %13 = tpu.matmul %11, %12, %cst_8 {dimension_numbers = #tpu.dot_dimension_numbers<[1], [0], [0], [1], [0, 0, 1, 1], [], []>} : vector<128x128xbf16>, vector<128x64xbf16>, vector<128x64xf32> -> vector<128x64xf32>
    %14 = arith.addf %13, %10 : vector<128x64xf32>
    %15 = vector.broadcast %6 : vector<128x1xf32> to vector<128x64xf32>
    %16 = arith.mulf %15, %14 : vector<128x64xf32>
    %17 = arith.truncf %16 : vector<128x64xf32> to vector<128x64xbf16>
    %c0_9 = arith.constant 0 : index
    %c0_10 = arith.constant 0 : index
    %18 = vector.load %arg2[%c0_9, %c0_10] : memref<64x128xbf16, #tpu.memory_space<vmem>>, vector<64x128xbf16>
    %cst_11 = arith.constant dense<0.000000e+00> : vector<128x128xf32>
    %19 = tpu.matmul %17, %18, %cst_11 {dimension_numbers = #tpu.dot_dimension_numbers<[1], [0], [0], [1], [0, 0, 1, 1], [], []>} : vector<128x64xbf16>, vector<64x128xbf16>, vector<128x128xf32> -> vector<128x128xf32>
    %20 = vector.broadcast %8 : vector<1x128xf32> to vector<128x128xf32>
    %21 = arith.addf %19, %20 : vector<128x128xf32>
    %cst_12 = arith.constant 0.000000e+00 : f32
    %22 = vector.broadcast %cst_12 : f32 to vector<128x128xf32>
    %23 = arith.maximumf %21, %22 : vector<128x128xf32>
    %c0_13 = arith.constant 0 : index
    %c0_14 = arith.constant 0 : index
    %24 = vector.load %arg5[%c0_13, %c0_14] : memref<1x128xf32, #tpu.memory_space<vmem>>, vector<1x128xf32>
    %25 = arith.truncf %23 : vector<128x128xf32> to vector<128x128xbf16>
    %c0_15 = arith.constant 0 : index
    %c0_16 = arith.constant 0 : index
    %26 = vector.load %arg4[%c0_15, %c0_16] : memref<128x128xbf16, #tpu.memory_space<vmem>>, vector<128x128xbf16>
    %cst_17 = arith.constant dense<0.000000e+00> : vector<128x128xf32>
    %27 = tpu.matmul %25, %26, %cst_17 {dimension_numbers = #tpu.dot_dimension_numbers<[1], [0], [0], [1], [0, 0, 1, 1], [], []>} : vector<128x128xbf16>, vector<128x128xbf16>, vector<128x128xf32> -> vector<128x128xf32>
    %28 = vector.broadcast %6 : vector<128x1xf32> to vector<128x128xf32>
    %29 = arith.mulf %28, %27 : vector<128x128xf32>
    %c0_18 = arith.constant 0 : index
    %c0_19 = arith.constant 0 : index
    %30 = vector.load %arg1[%c0_18, %c0_19] : memref<128x128xbf16, #tpu.memory_space<vmem>>, vector<128x128xbf16>
    %31 = arith.truncf %29 : vector<128x128xf32> to vector<128x128xbf16>
    %cst_20 = arith.constant dense<0.000000e+00> : vector<128x128xf32>
    %32 = tpu.matmul %30, %31, %cst_20 {dimension_numbers = #tpu.dot_dimension_numbers<[1], [0], [0], [1], [0, 0, 1, 1], [], []>} : vector<128x128xbf16>, vector<128x128xbf16>, vector<128x128xf32> -> vector<128x128xf32>
    %33 = arith.addf %32, %29 : vector<128x128xf32>
    %34 = vector.broadcast %6 : vector<128x1xf32> to vector<128x128xf32>
    %35 = arith.mulf %34, %33 : vector<128x128xf32>
    %36 = vector.broadcast %24 : vector<1x128xf32> to vector<128x128xf32>
    %37 = arith.addf %35, %36 : vector<128x128xf32>
    %cst_21 = arith.constant 0.000000e+00 : f32
    %38 = vector.broadcast %cst_21 : f32 to vector<128x128xf32>
    %39 = arith.maximumf %37, %38 : vector<128x128xf32>
    %c0_22 = arith.constant 0 : index
    %c0_23 = arith.constant 0 : index
    %40 = vector.load %arg7[%c0_22, %c0_23] : memref<1x16xf32, #tpu.memory_space<vmem>>, vector<1x16xf32>
    %41 = arith.truncf %39 : vector<128x128xf32> to vector<128x128xbf16>
    %c0_24 = arith.constant 0 : index
    %c0_25 = arith.constant 0 : index
    %42 = vector.load %arg6[%c0_24, %c0_25] : memref<128x16xbf16, #tpu.memory_space<vmem>>, vector<128x16xbf16>
    %cst_26 = arith.constant dense<0.000000e+00> : vector<128x16xf32>
    %43 = tpu.matmul %41, %42, %cst_26 {dimension_numbers = #tpu.dot_dimension_numbers<[1], [0], [0], [1], [0, 0, 1, 1], [], []>} : vector<128x128xbf16>, vector<128x16xbf16>, vector<128x16xf32> -> vector<128x16xf32>
    %44 = vector.broadcast %6 : vector<128x1xf32> to vector<128x16xf32>
    %45 = arith.mulf %44, %43 : vector<128x16xf32>
    %c0_27 = arith.constant 0 : index
    %c0_28 = arith.constant 0 : index
    %46 = vector.load %arg1[%c0_27, %c0_28] : memref<128x128xbf16, #tpu.memory_space<vmem>>, vector<128x128xbf16>
    %47 = arith.truncf %45 : vector<128x16xf32> to vector<128x16xbf16>
    %cst_29 = arith.constant dense<0.000000e+00> : vector<128x16xf32>
    %48 = tpu.matmul %46, %47, %cst_29 {dimension_numbers = #tpu.dot_dimension_numbers<[1], [0], [0], [1], [0, 0, 1, 1], [], []>} : vector<128x128xbf16>, vector<128x16xbf16>, vector<128x16xf32> -> vector<128x16xf32>
    %49 = arith.addf %48, %45 : vector<128x16xf32>
    %50 = vector.broadcast %6 : vector<128x1xf32> to vector<128x16xf32>
    %51 = arith.mulf %50, %49 : vector<128x16xf32>
    %52 = vector.broadcast %40 : vector<1x16xf32> to vector<128x16xf32>
    %53 = arith.addf %51, %52 : vector<128x16xf32>
    %cst_30 = arith.constant dense<0xFF800000> : vector<128xf32>
    %54 = vector.multi_reduction <maximumf>, %53, %cst_30 [1] : vector<128x16xf32> to vector<128xf32>
    %55 = vector.shape_cast %54 : vector<128xf32> to vector<128x1xf32>
    %56 = vector.broadcast %55 : vector<128x1xf32> to vector<128x16xf32>
    %57 = arith.subf %53, %56 : vector<128x16xf32>
    %58 = math.exp %57 : vector<128x16xf32>
    %cst_31 = arith.constant dense<0.000000e+00> : vector<128xf32>
    %59 = vector.multi_reduction <add>, %58, %cst_31 [1] : vector<128x16xf32> to vector<128xf32>
    %60 = vector.shape_cast %59 : vector<128xf32> to vector<128x1xf32>
    %61 = math.log %60 : vector<128x1xf32>
    %62 = vector.broadcast %61 : vector<128x1xf32> to vector<128x16xf32>
    %63 = arith.subf %57, %62 : vector<128x16xf32>
    %c0_32 = arith.constant 0 : index
    %c0_33 = arith.constant 0 : index
    %64 = vector.load %arg8[%c0_32, %c0_33] : memref<128x16xf32, #tpu.memory_space<vmem>>, vector<128x16xf32>
    tpu.vector_store %arg8[%c0_32, %c0_33], %63 {strides = array<i32>} : memref<128x16xf32, #tpu.memory_space<vmem>>, vector<128x16xf32>,
    return
  }
}

</mosaic_0001>

<bundles_post_ra>
// kernel: tpu_custom_call.1
= control target key start
LH: loop header
LB: loop body
LE: loop exit
PB: predicated region body
PF: predicated region fallthrough
CT: control target
= control target key end

     0   :  { %s2503_s1 = inlined_call_operand.vmem [shape: bf16[128,128], index: 1, kind: input, shape index: {}]   ;;  %s2504_s0 = inlined_call_operand.vmem [shape: f32[128,64], index: 0, kind: input, shape index: {}]   ;;  %s2505_s3 = inlined_call_operand.vmem [shape: f32[1,128], index: 3, kind: input, shape index: {}]   ;;  %s2506_s2 = inlined_call_operand.vmem [shape: bf16[64,128], index: 2, kind: input, shape index: {}]   ;;  %s2507_s4 = inlined_call_operand.vmem [shape: bf16[128,128], index: 4, kind: input, shape index: {}]   ;;  %s2508_s5 = inlined_call_operand.vmem [shape: f32[1,128], index: 5, kind: input, shape index: {}]   ;;  %s2509_s6 = inlined_call_operand.vmem [shape: bf16[128,16], index: 6, kind: input, shape index: {}]   ;;  %s2510_s7 = inlined_call_operand.vmem [shape: f32[1,16], index: 7, kind: input, shape index: {}]   ;;  %s2511_s8 = inlined_call_operand.vmem [shape: f32[128,16], index: 8, kind: output, shape index: {}]  }
   0x1   :  { %v44_v0 = vld [vmem:[%s2503_s1 + $0x38] sm:$0xff]   ;;  %v42_v1 = vld [vmem:[%s2503_s1 + $0x30] sm:$0xff]   ;;  %v40_v2 = vld [vmem:[%s2503_s1 + $0x28] sm:$0xff]  }
   0x2   :  { %v60_v3 = vunpack.c.l.bf16 %v44_v0  ;;  %v58_v4 = vunpack.c.l.bf16 %v42_v1  ;;  %v56_v5 = vunpack.c.l.bf16 %v40_v2  ;;  %v61_v6 = vunpack.c.h.bf16 %v44_v0  ;;  %v39_v9 = vld [vmem:[%s2503_s1 + $0x20] sm:$0xff]   ;;  %v36_v10 = vld [vmem:[%s2503_s1 + $0x18] sm:$0xff]   ;;  %v35_v14 = vld [vmem:[%s2503_s1 + $0x10] sm:$0xff]  }
   0x3   :  { %v59_v7 = vunpack.c.h.bf16 %v42_v1  ;;  %v57_v8 = vunpack.c.h.bf16 %v40_v2  ;;  %v55_v11 = vunpack.c.h.bf16 %v39_v9  ;;  %v54_v12 = vunpack.c.l.bf16 %v39_v9  ;;  %v33_v18 = vld [vmem:[%s2503_s1 + $0x8] sm:$0xff]   ;;  %v30_v19 = vld [vmem:[%s2503_s1] sm:$0xff]  }
   0x4   :  { %90 = vadd.xlane.f32.xlu0 %v60_v3  ;;  %86 = vadd.xlane.f32.xlu1 %v58_v4  ;;  %v52_v13 = vunpack.c.l.bf16 %v36_v10  ;;  %v53_v15 = vunpack.c.h.bf16 %v36_v10  ;;  %v50_v16 = vunpack.c.l.bf16 %v35_v14  ;;  %v51_v17 = vunpack.c.h.bf16 %v35_v14 }
   0x5   :  { %82 = vadd.xlane.f32.xlu2 %v56_v5  ;;  %v49_v20 = vunpack.c.h.bf16 %v33_v18  ;;  %v48_v21 = vunpack.c.l.bf16 %v33_v18  ;;  %v46_v22 = vunpack.c.l.bf16 %v30_v19  ;;  %v47_v23 = vunpack.c.h.bf16 %v30_v19 }
   0xc   :  { %92 = vadd.xlane.f32.xlu0 %v61_v6  ;;  %88 = vadd.xlane.f32.xlu1 %v59_v7 }
   0xd   :  { %84 = vadd.xlane.f32.xlu2 %v57_v8 }
  0x14   :  { %80 = vadd.xlane.f32.xlu1 %v55_v11  ;;  %78 = vadd.xlane.f32.xlu0 %v54_v12 }
  0x15   :  { %74 = vadd.xlane.f32.xlu2 %v52_v13 }
  0x1c   :  { %76 = vadd.xlane.f32.xlu0 %v53_v15  ;;  %70 = vadd.xlane.f32.xlu1 %v50_v16 }
  0x1d   :  { %72 = vadd.xlane.f32.xlu2 %v51_v17 }
  0x24   :  { %68 = vadd.xlane.f32.xlu1 %v49_v20  ;;  %66 = vadd.xlane.f32.xlu0 %v48_v21  ;;  %v284_v20 = vld [vmem:[%s2504_s0 + $0x70] sm:$0xff] }
  0x25   :  { %62 = vadd.xlane.f32.xlu2 %v46_v22 }
  0x2c   :  { %64 = vadd.xlane.f32.xlu0 %v47_v23  ;;  %v282_v23 = vld [vmem:[%s2504_s0 + $0x60] sm:$0xff] }
  0x77   :  { %v91_v24 = vpop.xlane.xlu0 %90  ;;  %v87_v25 = vpop.xlane.xlu1 %86 }
  0x78   :  { %v1574_v26 = vadd.f32 1.0, %v91_v24  ;;  %v1576_v27 = vadd.f32 1.0, %v87_v25  ;;  %v83_v28 = vpop.xlane.xlu2 %82 }
  0x79   :  { %v1578_v29 = vadd.f32 1.0, %v83_v28 }
  0x7a   :  { %1409 = vrsqrt.f32 %v1574_v26  ;;  %vm256_vm0 = vweird.f32 %v1574_v26  ;;  %vm236_vm1 = vweird.f32 %v1576_v27 }
  0x7b   :  { %1411 = vrsqrt.f32 %v1576_v27  ;;  %vm216_vm2 = vweird.f32 %v1578_v29 }
  0x7c   :  { %1413 = vrsqrt.f32 %v1578_v29 }
  0x7f   :  { %v93_v30 = vpop.xlane.xlu0 %92  ;;  %v89_v31 = vpop.xlane.xlu1 %88 }
  0x80   :  { %v1583_v32 = vpop.eup %1409  ;;  %v1585_v33 = vadd.f32 1.0, %v93_v30  ;;  %v1587_v34 = vadd.f32 1.0, %v89_v31  ;;  %v85_v35 = vpop.xlane.xlu2 %84  ;;  %v280_v30 = vld [vmem:[%s2504_s0 + $0x50] sm:$0xff] }
  0x81   :  { %v1589_v36 = vpop.eup %1411  ;;  %v251_v37 = vmul.f32 %v1583_v32, %v1574_v26  ;;  %v1593_v38 = vadd.f32 1.0, %v85_v35  ;;  %vm257_vm3 = vweird.f32 %v1583_v32 }
  0x82   :  { %v1595_v39 = vpop.eup %1413  ;;  %v231_v40 = vmul.f32 %v1589_v36, %v1576_v27  ;;  %1415 = vrsqrt.f32 %v1585_v33  ;;  %vm237_vm4 = vweird.f32 %v1589_v36  ;;  %vm266_vm6 = vweird.f32 %v1585_v33  ;;  %vm258_vm9 = vmor %vm256_vm0, %vm257_vm3 }
  0x83   :  { %v252_v41 = vmul.f32 %v1583_v32, %v251_v37  ;;  %v211_v42 = vmul.f32 %v1595_v39, %v1578_v29  ;;  %1417 = vrsqrt.f32 %v1587_v34  ;;  %vm217_vm5 = vweird.f32 %v1595_v39  ;;  %vm238_vm12 = vmor %vm236_vm1, %vm237_vm4  ;;  %v285_v29 = vld [vmem:[%s2504_s0 + $0x78] sm:$0xff] }
  0x84   :  { %v232_v43 = vmul.f32 %v1589_v36, %v231_v40  ;;  %1419 = vrsqrt.f32 %v1593_v38  ;;  %vm246_vm7 = vweird.f32 %v1587_v34  ;;  %vm226_vm8 = vweird.f32 %v1593_v38  ;;  %vm218_vm13 = vmor %vm216_vm2, %vm217_vm5 }
  0x85   :  { %v253_v44 = vmul.f32 0.5, %v252_v41  ;;  %v212_v45 = vmul.f32 %v1595_v39, %v211_v42 }
  0x86   :  { %v233_v46 = vmul.f32 0.5, %v232_v43 }
  0x87   :  { %v213_v47 = vmul.f32 0.5, %v212_v45  ;;  %v81_v48 = vpop.xlane.xlu1 %80  ;;  %v79_v49 = vpop.xlane.xlu0 %78  ;;  %v254_v51 = vsub.f32 1.5, %v253_v44 }
  0x88   :  { %v1416_v50 = vpop.eup %1415  ;;  %v1608_v52 = vadd.f32 1.0, %v81_v48  ;;  %v75_v53 = vpop.xlane.xlu2 %74  ;;  %v234_v55 = vsub.f32 1.5, %v233_v46  ;;  %v1614_v57 = vadd.f32 1.0, %v79_v49  ;;  %v283_v46 = vld [vmem:[%s2504_s0 + $0x68] sm:$0xff] }
  0x89   :  { %v1610_v54 = vpop.eup %1417  ;;  %v261_v56 = vmul.f32 %v1416_v50, %v1585_v33  ;;  %v214_v59 = vsub.f32 1.5, %v213_v47  ;;  %v255_v63 = vmul.f32 %v1583_v32, %v254_v51  ;;  %v1636_v6 = vadd.f32 1.0, %v75_v53 }
  0x8a   :  { %v1616_v58 = vpop.eup %1419  ;;  %v241_v60 = vmul.f32 %v1610_v54, %v1587_v34  ;;  %1421 = vrsqrt.f32 %v1608_v52  ;;  %v235_v1 = vmul.f32 %v1589_v36, %v234_v55  ;;  %vm267_vm10 = vweird.f32 %v1416_v50  ;;  %v281_v55 = vld [vmem:[%s2504_s0 + $0x58] sm:$0xff] }
  0x8b   :  { %v262_v61 = vmul.f32 %v1416_v50, %v261_v56  ;;  %v221_v62 = vmul.f32 %v1616_v58, %v1593_v38  ;;  %1423 = vrsqrt.f32 %v1614_v57  ;;  %v215_v4 = vmul.f32 %v1595_v39, %v214_v59  ;;  %vm268_vm14 = vmor %vm266_vm6, %vm267_vm10 }
  0x8c   :  { %v242_v0 = vmul.f32 %v1610_v54, %v241_v60  ;;  %vm247_vm11 = vweird.f32 %v1610_v54  ;;  %v1646_v12 = vsel %vm258_vm9, %v1583_v32, %v255_v63  ;;  %1425 = vrsqrt.f32 %v1636_v6 }
  0x8d   :  { %v263_v2 = vmul.f32 0.5, %v262_v61  ;;  %v222_v3 = vmul.f32 %v1616_v58, %v221_v62  ;;  %v1656_v16 = vsel %vm238_vm12, %v1589_v36, %v235_v1  ;;  %v1668_v21 = vsel %vm218_vm13, %v1595_v39, %v215_v4  ;;  %vm248_vm1 = vmor %vm246_vm7, %vm247_vm11 }
  0x8e   :  { %v243_v5 = vmul.f32 0.5, %v242_v0  ;;  %vm227_vm15 = vweird.f32 %v1616_v58  ;;  %vm206_vm0 = vweird.f32 %v1608_v52  ;;  %v1699_v32 = vmul.f32 %v284_v20, %v1646_v12 }
  0x8f   :  { %v264_v7 = vsub.f32 1.5, %v263_v2  ;;  %v223_v8 = vmul.f32 0.5, %v222_v3  ;;  %v77_v9 = vpop.xlane.xlu0 %76  ;;  %v71_v10 = vpop.xlane.xlu1 %70  ;;  %v1704_v36 = vmul.f32 %v282_v23, %v1656_v16  ;;  %vm196_vm2 = vweird.f32 %v1614_v57  ;;  %vm228_vm5 = vmor %vm226_vm8, %vm227_vm15 }
  0x90   :  { %v1643_v11 = vpop.eup %1421  ;;  %v244_v13 = vsub.f32 1.5, %v243_v5  ;;  %v1653_v14 = vadd.f32 1.0, %v77_v9  ;;  %v73_v15 = vpop.xlane.xlu2 %72  ;;  %v1686_v28 = vadd.f32 1.0, %v71_v10  ;;  %vm176_vm3 = vweird.f32 %v1636_v6 }
  0x91   :  { %v265_v17 = vmul.f32 %v1416_v50, %v264_v7  ;;  %v224_v18 = vsub.f32 1.5, %v223_v8  ;;  %v201_v19 = vmul.f32 %v1643_v11, %v1608_v52  ;;  %v1675_v22 = vadd.f32 1.0, %v73_v15  ;;  %v1680_v24 = vpop.eup %1423 }
  0x92   :  { %1427 = vrsqrt.f32 %v1653_v14  ;;  %v245_v26 = vmul.f32 %v1610_v54, %v244_v13  ;;  %v191_v31 = vmul.f32 %v1680_v24, %v1614_v57  ;;  %v1706_v37 = vpop.eup %1425  ;;  %v1719_v41 = vmul.f32 %v280_v30, %v1668_v21  ;;  %v278_v57 = vld [vmem:[%s2504_s0 + $0x40] sm:$0xff]  ;;  %v279_v30 = vld [vmem:[%s2504_s0 + $0x48] sm:$0xff] }
  0x93   :  { %v1682_v25 = vsel %vm268_vm14, %v1416_v50, %v265_v17  ;;  %v202_v27 = vmul.f32 %v1643_v11, %v201_v19  ;;  %1429 = vrsqrt.f32 %v1675_v22  ;;  %v225_v33 = vmul.f32 %v1616_v58, %v224_v18 }
  0x94   :  { %1431 = vrsqrt.f32 %v1686_v28  ;;  %v192_v39 = vmul.f32 %v1680_v24, %v191_v31  ;;  %v1716_v40 = vmul.f32 %v285_v29, %v1682_v25  ;;  %v1722_v42 = vsel %vm248_vm1, %v1610_v54, %v245_v26 }
  0x95   :  { %v203_v35 = vmul.f32 0.5, %v202_v27  ;;  %vm207_vm4 = vweird.f32 %v1643_v11  ;;  %v171_v34 = vmul.f32 %v1706_v37, %v1636_v6  ;;  %vm197_vm6 = vweird.f32 %v1680_v24 }
  0x96   :  { %v193_v48 = vmul.f32 0.5, %v192_v39  ;;  %v310_v50 = vpack.c.bf16 %v1716_v40, %v1699_v32  ;;  %v1742_v51 = vsel %vm228_vm5, %v1616_v58, %v225_v33  ;;  %vm186_vm7 = vweird.f32 %v1653_v14  ;;  %vm208_vm11 = vmor %vm206_vm0, %vm207_vm4 }
  0x97   :  { %v204_v43 = vsub.f32 1.5, %v203_v35  ;;  %v69_v44 = vpop.xlane.xlu1 %68  ;;  %v67_v45 = vpop.xlane.xlu0 %66  ;;  %v172_v53 = vmul.f32 %v1706_v37, %v171_v34  ;;  %vm166_vm8 = vweird.f32 %v1675_v22  ;;  %v1759_v58 = vmul.f32 %v283_v46, %v1722_v42  ;;  %vm198_vm12 = vmor %vm196_vm2, %vm197_vm6  ;;  %v277_v35 = vld [vmem:[%s2504_s0 + $0x38] sm:$0xff] }
  0x98   :  { %v1730_v47 = vpop.eup %1427  ;;  %v1737_v49 = vadd.f32 1.0, %v69_v44  ;;  %v1748_v38 = vadd.f32 1.0, %v67_v45  ;;  %v194_v60 = vsub.f32 1.5, %v193_v48  ;;  %359 = vmatpush.bf16.msra.mxu0 %v310_v50  ;;  %1394 = vmatpush.bf16.msra.mxu2 %v310_v50  ;;  %vm177_vm9 = vweird.f32 %v1706_v37  ;;  %v63_v1 = vpop.xlane.xlu2 %62  ;;  %v276_v44 = vld [vmem:[%s2504_s0 + $0x30] sm:$0xff] }
  0x99   :  { %v181_v54 = vmul.f32 %v1730_v47, %v1653_v14  ;;  %v1753_v56 = vpop.eup %1429  ;;  %v205_v59 = vmul.f32 %v1643_v11, %v204_v43  ;;  %v173_v62 = vmul.f32 0.5, %v172_v53  ;;  %vm187_vm10 = vweird.f32 %v1730_v47  ;;  %vm178_vm14 = vmor %vm176_vm3, %vm177_vm9 }
  0x9a   :  { %1433 = vrsqrt.f32 %v1737_v49  ;;  %v1761_v61 = vpop.eup %1431  ;;  %v161_v0 = vmul.f32 %v1753_v56, %v1675_v22  ;;  %v195_v2 = vmul.f32 %v1680_v24, %v194_v60  ;;  %v1772_v4 = vmul.f32 %v281_v55, %v1742_v51  ;;  %vm188_vm0 = vmor %vm186_vm7, %vm187_vm10 }
  0x9b   :  { %v182_v63 = vmul.f32 %v1730_v47, %v181_v54  ;;  %v151_v3 = vmul.f32 %v1761_v61, %v1686_v28  ;;  %v174_v5 = vsub.f32 1.5, %v173_v62  ;;  %1435 = vrsqrt.f32 %v1748_v38 }
  0x9c   :  { %v162_v8 = vmul.f32 %v1753_v56, %v161_v0  ;;  %v1781_v9 = vsel %vm208_vm11, %v1643_v11, %v205_v59  ;;  %v1784_v13 = vadd.f32 1.0, %v63_v1  ;;  %v309_v15 = vpack.c.bf16 %v1759_v58, %v1704_v36  ;;  %v275_v0 = vld [vmem:[%s2504_s0 + $0x28] sm:$0xff] }
  0x9d   :  { %v183_v7 = vmul.f32 0.5, %v182_v63  ;;  %v152_v10 = vmul.f32 %v1761_v61, %v151_v3  ;;  %v175_v52 = vmul.f32 %v1706_v37, %v174_v5  ;;  %vm167_vm13 = vweird.f32 %v1753_v56  ;;  %v274_v63 = vld [vmem:[%s2504_s0 + $0x20] sm:$0xff] }
  0x9e   :  { %v163_v18 = vmul.f32 0.5, %v162_v8  ;;  %v1797_v20 = vsel %vm198_vm12, %v1680_v24, %v195_v2  ;;  %1437 = vrsqrt.f32 %v1784_v13  ;;  %360 = vmatpush.bf16.msra.mxu0 %v309_v15  ;;  %1395 = vmatpush.bf16.msra.mxu2 %v309_v15  ;;  %vm157_vm15 = vweird.f32 %v1761_v61  ;;  %vm168_vm1 = vmor %vm166_vm8, %vm167_vm13  ;;  %v273_v15 = vld [vmem:[%s2504_s0 + $0x18] sm:$0xff] }
  0x9f   :  { %v184_v17 = vsub.f32 1.5, %v183_v7  ;;  %v65_v11 = vpop.xlane.xlu0 %64  ;;  %v153_v23 = vmul.f32 0.5, %v152_v10  ;;  %v1817_v31 = vsel %vm178_vm14, %v1706_v37, %v175_v52  ;;  %v308_v33 = vpack.c.bf16 %v1772_v4, %v1719_v41 }
  0xa0   :  { %v1794_v19 = vpop.eup %1433  ;;  %v1800_v26 = vadd.f32 1.0, %v65_v11  ;;  %v164_v24 = vsub.f32 1.5, %v163_v18  ;;  %v1835_v14 = vmul.f32 %v278_v57, %v1797_v20  ;;  %vm156_vm2 = vweird.f32 %v1686_v28  ;;  %v272_v11 = vld [vmem:[%s2504_s0 + $0x10] sm:$0xff] }
  0xa1   :  { %v185_v27 = vmul.f32 %v1730_v47, %v184_v17  ;;  %v141_v29 = vmul.f32 %v1794_v19, %v1737_v49  ;;  %v154_v6 = vsub.f32 1.5, %v153_v23  ;;  %v1436_v39 = vpop.eup %1435  ;;  %vm158_vm3 = vmor %vm156_vm2, %vm157_vm15  ;;  %vm147_vm4 = vweird.f32 %v1794_v19 }
  0xa2   :  { %1439 = vrsqrt.f32 %v1800_v26  ;;  %v165_v37 = vmul.f32 %v1753_v56, %v164_v24  ;;  %v131_v46 = vmul.f32 %v1436_v39, %v1748_v38  ;;  %361 = vmatpush.bf16.msra.mxu0 %v308_v33  ;;  %1396 = vmatpush.bf16.msra.mxu2 %v308_v33  ;;  %v1859_v59 = vmul.f32 %v276_v44, %v1817_v31 }
  0xa3   :  { %v1830_v43 = vsel %vm188_vm0, %v1730_v47, %v185_v27  ;;  %v142_v34 = vmul.f32 %v1794_v19, %v141_v29  ;;  %v155_v45 = vmul.f32 %v1761_v61, %v154_v6  ;;  %v1843_v47 = vmul.f32 %v279_v30, %v1781_v9 }
  0xa4   :  { %v1851_v50 = vmul.f32 %v277_v35, %v1830_v43  ;;  %v1438_v53 = vpop.eup %1437  ;;  %v132_v54 = vmul.f32 %v1436_v39, %v131_v46  ;;  %v1862_v22 = vsel %vm168_vm1, %v1753_v56, %v165_v37  ;;  %vm146_vm5 = vweird.f32 %v1737_v49  ;;  %v271_v37 = vld [vmem:[%s2504_s0 + $0x8] sm:$0xff]  ;;  %v1930_v46 = vld [vmem:[%s2503_s1 + $0x20] sm:$0xff] }
  0xa5   :  { %v143_v48 = vmul.f32 0.5, %v142_v34  ;;  %v307_v55 = vpack.c.bf16 %v1843_v47, %v1835_v14  ;;  %v1865_v28 = vsel %vm158_vm3, %v1761_v61, %v155_v45  ;;  %v111_v62 = vmul.f32 %v1438_v53, %v1784_v13  ;;  %vm148_vm6 = vmor %vm146_vm5, %vm147_vm4  ;;  %v1925_v45 = vld [vmem:[%s2503_s1] sm:$0xff] }
  0xa6   :  { %v133_v2 = vmul.f32 0.5, %v132_v54  ;;  %v306_v56 = vpack.c.bf16 %v1851_v50, %v1859_v59  ;;  %vm137_vm7 = vweird.f32 %v1436_v39  ;;  %v1882_v8 = vmul.f32 %v274_v63, %v1865_v28  ;;  %v1949_v54 = vld [vmem:[%s2503_s1 + $0x10] sm:$0xff]  ;;  %v1377_v63 = vld [vmem:[%s2506_s2 + $0x18] sm:$0xff] }
  0xa7   :  { %v144_v60 = vsub.f32 1.5, %v143_v48  ;;  %362 = vmatpush.bf16.msra.mxu0 %v307_v55  ;;  %1397 = vmatpush.bf16.msra.mxu2 %v307_v55  ;;  %v112_v3 = vmul.f32 %v1438_v53, %v111_v62  ;;  %v1885_v10 = vmul.f32 %v275_v0, %v1862_v22  ;;  %vm136_vm8 = vweird.f32 %v1748_v38  ;;  %v1937_v48 = vld [vmem:[%s2503_s1 + $0x8] sm:$0xff]  ;;  %v1954_v55 = vld [vmem:[%s2503_s1 + $0x30] sm:$0xff]  ;;  %v1966_v62 = vld [vmem:[%s2503_s1 + $0x38] sm:$0xff] }
  0xa8   :  { %v1440_v1 = vpop.eup %1439  ;;  %v134_v7 = vsub.f32 1.5, %v133_v2  ;;  %vm116_vm9 = vweird.f32 %v1784_v13  ;;  %vm138_vm10 = vmor %vm136_vm8, %vm137_vm7  ;;  %vm117_vm11 = vweird.f32 %v1438_v53  ;;  %vm126_vm14 = vweird.f32 %v1800_v26  ;;  %496 = vmatpush.bf16.msra.mxu1 %v1377_v63  ;;  %v1376_v0 = vld [vmem:[%s2506_s2 + $0x10] sm:$0xff]  ;;  %1402 = vmatpush.bf16.msra.mxu3 %v1377_v63  ;;  %v1374_v2 = vld [vmem:[%s2506_s2] sm:$0xff] }
  0xa9   :  { %v145_v61 = vmul.f32 %v1794_v19, %v144_v60  ;;  %v121_v5 = vmul.f32 %v1440_v1, %v1800_v26  ;;  %v113_v52 = vmul.f32 0.5, %v112_v3  ;;  %v305_v38 = vpack.c.bf16 %v1885_v10, %v1882_v8  ;;  %vm118_vm13 = vmor %vm116_vm9, %vm117_vm11  ;;  %v1961_v60 = vld [vmem:[%s2503_s1 + $0x18] sm:$0xff] }
  0xaa   :  { %v135_v18 = vmul.f32 %v1436_v39, %v134_v7  ;;  %vm127_vm12 = vweird.f32 %v1440_v1  ;;  %vm467_vm0 = vcmask 523264   ;;  %vm1033_vm1 = vcmask 130048  }
  0xab   :  { %v1891_v49 = vsel %vm148_vm6, %v1794_v19, %v145_v61  ;;  %v122_v17 = vmul.f32 %v1440_v1, %v121_v5  ;;  %363 = vmatpush.bf16.msra.mxu0 %v306_v56  ;;  %1398 = vmatpush.bf16.msra.mxu2 %v306_v56  ;;  %v114_v23 = vsub.f32 1.5, %v113_v52  ;;  %vm128_vm15 = vmor %vm126_vm14, %vm127_vm12 }
  0xac   :  { %v1899_v19 = vmul.f32 %v273_v15, %v1891_v49  ;;  %v1901_v27 = vsel %vm138_vm10, %v1436_v39, %v135_v18  ;;  %v270_v39 = vld [vmem:[%s2504_s0] sm:$0xff]  ;;  %497 = vmatpush.bf16.msra.mxu1 %v1376_v0  ;;  %1403 = vmatpush.bf16.msra.mxu3 %v1376_v0 }
  0xad   :  { %v123_v57 = vmul.f32 0.5, %v122_v17  ;;  %v115_v24 = vmul.f32 %v1438_v53, %v114_v23  ;;  %v289_v30 = vmul.f32 %v272_v11, %v1901_v27 }
  0xaf   :  { %v124_v29 = vsub.f32 1.5, %v123_v57  ;;  %364 = vmatpush.bf16.msra.mxu0 %v305_v38  ;;  %1399 = vmatpush.bf16.msra.mxu2 %v305_v38  ;;  %v1908_v6 = vsel %vm118_vm13, %v1438_v53, %v115_v24  ;;  %v304_v35 = vpack.c.bf16 %v1899_v19, %v289_v30  ;;  %v1942_v53 = vld [vmem:[%s2503_s1 + $0x28] sm:$0xff] }
  0xb0   :  { %v287_v34 = vmul.f32 %v270_v39, %v1908_v6 }
  0xb1   :  { %v125_v33 = vmul.f32 %v1440_v1, %v124_v29 }
  0xb3   :  { %v1918_v13 = vsel %vm128_vm15, %v1440_v1, %v125_v33  ;;  %365 = vmatpush.bf16.msra.mxu0 %v304_v35  ;;  %1400 = vmatpush.bf16.msra.mxu2 %v304_v35  ;;  %v1375_v1 = vld [vmem:[%s2506_s2 + $0x8] sm:$0xff] }
  0xb4   :  { %v288_v44 = vmul.f32 %v271_v37, %v1918_v13  ;;  %498 = vmatpush.bf16.msra.mxu1 %v1375_v1  ;;  %1404 = vmatpush.bf16.msra.mxu3 %v1375_v1 }
  0xb6   :  { %v303_v26 = vpack.c.bf16 %v288_v44, %v287_v34 }
  0xb8   :  { %366 = vmatpush.bf16.msra.mxu0 %v303_v26  ;;  %1401 = vmatpush.bf16.msra.mxu2 %v303_v26 }
  0xb9   :  { %499 = vmatpush.bf16.msra.mxu1 %v1374_v2  ;;  %1405 = vmatpush.bf16.msra.mxu3 %v1374_v2 }
  0xbb   :  { %367 = vmatmul.bf16.vlgmr.msra.gmra.mxu0 %v1925_v45  ;;  %387 = vmatmul.bf16.vlgmr.msra.gmra.mxu2 %v1930_v46 }
  0xcb   :  { %372 = vmatmul.bf16.gmra.mxu0 %v1937_v48  ;;  %392 = vmatmul.bf16.gmra.mxu2 %v1942_v53 }
  0xdb   :  { %377 = vmatmul.bf16.gmra.mxu0 %v1949_v54  ;;  %397 = vmatmul.bf16.gmra.mxu2 %v1954_v55 }
  0xeb   :  { %382 = vmatmul.bf16.gmra.mxu0 %v1961_v60  ;;  %402 = vmatmul.bf16.gmra.mxu2 %v1966_v62 }
 0x138   :  { %v368_v56 = vpop.f32.mrf.mxu0 }
 0x139   :  { %v369_v3 = vadd.f32 %v368_v56, %v287_v34 }
 0x13b   :  { %v408_v15 = vmul.f32 %v369_v3, %v1908_v6 }
 0x13e   :  { %v1982_v61 = vpop.f32.mrf.mxu2 }
 0x140   :  { %v370_v5 = vpop.f32.mrf.mxu0 }
 0x141   :  { %v371_v7 = vadd.f32 %v370_v5, %v288_v44 }
 0x143   :  { %v409_v52 = vmul.f32 %v371_v7, %v1918_v13 }
 0x145   :  { %v424_v17 = vpack.c.bf16 %v409_v52, %v408_v15  ;;  %v1385_v15 = vld [vmem:[%s2507_s4 + $0x38] sm:$0xff] }
 0x146   :  { %v390_v18 = vpop.f32.mrf.mxu2  ;;  %630 = vmatpush.bf16.msrb.mxu2 %v1385_v15 }
 0x147   :  { %1294 = vmatmul.msk.bf16.vlgmr.msra.gmra.mxu1 %vm467_vm0, %v424_v17 }
 0x148   :  { %v373_v11 = vpop.f32.mrf.mxu0 }
 0x149   :  { %v374_v57 = vadd.f32 %v373_v11, %v289_v30 }
 0x14b   :  { %v410_v29 = vmul.f32 %v374_v57, %v1901_v27 }
 0x14e   :  { %v393_v23 = vpop.f32.mrf.mxu2 }
 0x14f   :  { %v394_v35 = vadd.f32 %v393_v23, %v1719_v41 }
 0x150   :  { %v375_v38 = vpop.f32.mrf.mxu0 }
 0x151   :  { %v376_v24 = vadd.f32 %v375_v38, %v1899_v19  ;;  %v418_v26 = vmul.f32 %v394_v35, %v1668_v21 }
 0x153   :  { %v411_v33 = vmul.f32 %v376_v24, %v1891_v49  ;;  %v1382_v24 = vld [vmem:[%s2507_s4 + $0x20] sm:$0xff] }
 0x155   :  { %v425_v39 = vpack.c.bf16 %v411_v33, %v410_v29 }
 0x156   :  { %v395_v37 = vpop.f32.mrf.mxu2 }
 0x157   :  { %v396_v34 = vadd.f32 %v395_v37, %v1772_v4  ;;  %1295 = vmatmul.msk.bf16.gmra.mxu1 %vm467_vm0, %v425_v39 }
 0x158   :  { %v378_v44 = vpop.f32.mrf.mxu0 }
 0x159   :  { %v419_v30 = vmul.f32 %v396_v34, %v1742_v51  ;;  %v379_v0 = vadd.f32 %v378_v44, %v1882_v8 }
 0x15b   :  { %v429_v63 = vpack.c.bf16 %v419_v30, %v418_v26  ;;  %v412_v2 = vmul.f32 %v379_v0, %v1865_v28  ;;  %v391_v26 = vadd.f32 %v390_v18, %v1843_v47  ;;  %v389_v30 = vadd.f32 %v1982_v61, %v1835_v14  ;;  %v1380_v47 = vld [vmem:[%s2507_s4 + $0x10] sm:$0xff]  ;;  %v1379_v14 = vld [vmem:[%s2507_s4 + $0x8] sm:$0xff]  ;;  %v1378_v61 = vld [vmem:[%s2507_s4] sm:$0xff] }
 0x15c   :  { %v1406_v0 = vld [vmem:[%s2505_s3] ss:$0 sm:$0xff] }
 0x15d   :  { %1299 = vmatmul.msk.bf16.vlgmr.msra.gmra.mxu3 %vm467_vm0, %v429_v63  ;;  %v416_v63 = vmul.f32 %v389_v30, %v1797_v20 }
 0x15e   :  { %v398_v19 = vpop.f32.mrf.mxu2 }
 0x15f   :  { %v399_v56 = vadd.f32 %v398_v19, %v1704_v36  ;;  %v1384_v36 = vld [vmem:[%s2507_s4 + $0x30] sm:$0xff] }
 0x160   :  { %v380_v1 = vpop.f32.mrf.mxu0  ;;  %631 = vmatpush.bf16.msrb.mxu2 %v1384_v36 }
 0x161   :  { %v381_v41 = vadd.f32 %v380_v1, %v1885_v10  ;;  %v420_v52 = vmul.f32 %v399_v56, %v1656_v16 }
 0x163   :  { %v413_v4 = vmul.f32 %v381_v41, %v1862_v22 }
 0x165   :  { %v426_v3 = vpack.c.bf16 %v413_v4, %v412_v2 }
 0x166   :  { %v400_v5 = vpop.f32.mrf.mxu2 }
 0x167   :  { %v401_v7 = vadd.f32 %v400_v5, %v1759_v58  ;;  %1296 = vmatmul.msk.bf16.gmra.mxu1 %vm467_vm0, %v426_v3  ;;  %v1383_v58 = vld [vmem:[%s2507_s4 + $0x28] sm:$0xff] }
 0x168   :  { %v383_v8 = vpop.f32.mrf.mxu0  ;;  %632 = vmatpush.bf16.msrb.mxu2 %v1383_v58 }
 0x169   :  { %v421_v10 = vmul.f32 %v401_v7, %v1722_v42  ;;  %v384_v23 = vadd.f32 %v383_v8, %v1859_v59 }
 0x16b   :  { %v430_v17 = vpack.c.bf16 %v421_v10, %v420_v52  ;;  %v414_v29 = vmul.f32 %v384_v23, %v1817_v31 }
 0x16c   :  { %633 = vmatpush.bf16.msrb.mxu2 %v1382_v24 }
 0x16d   :  { %1300 = vmatmul.msk.bf16.gmra.mxu3 %vm467_vm0, %v430_v17 }
 0x16e   :  { %v403_v11 = vpop.f32.mrf.mxu2 }
 0x16f   :  { %v404_v35 = vadd.f32 %v403_v11, %v1699_v32  ;;  %v417_v32 = vmul.f32 %v391_v26, %v1781_v9 }
 0x170   :  { %v385_v57 = vpop.f32.mrf.mxu0 }
 0x171   :  { %v386_v38 = vadd.f32 %v385_v57, %v1851_v50  ;;  %v422_v50 = vmul.f32 %v404_v35, %v1646_v12  ;;  %v428_v19 = vpack.c.bf16 %v417_v32, %v416_v63 }
 0x173   :  { %v415_v33 = vmul.f32 %v386_v38, %v1830_v43 }
 0x175   :  { %v427_v39 = vpack.c.bf16 %v415_v33, %v414_v29 }
 0x176   :  { %v405_v37 = vpop.f32.mrf.mxu2 }
 0x177   :  { %v406_v34 = vadd.f32 %v405_v37, %v1716_v40  ;;  %1297 = vmatmul.msk.bf16.gmra.mxu1 %vm467_vm0, %v427_v39  ;;  %v1381_v40 = vld [vmem:[%s2507_s4 + $0x18] sm:$0xff] }
 0x178   :  { %634 = vmatpush.bf16.msrb.mxu2 %v1381_v40 }
 0x179   :  { %v423_v59 = vmul.f32 %v406_v34, %v1682_v25 }
 0x17b   :  { %v431_v44 = vpack.c.bf16 %v423_v59, %v422_v50 }
 0x17c   :  { %635 = vmatpush.bf16.msrb.mxu2 %v1380_v47 }
 0x17d   :  { %1301 = vmatmul.msk.bf16.gmra.mxu3 %vm467_vm0, %v431_v44 }
 0x180   :  { %636 = vmatpush.bf16.msrb.mxu2 %v1379_v14 }
 0x184   :  { %637 = vmatpush.bf16.msrb.mxu2 %v1378_v61 }
 0x187   :  { %1298 = vmatmul.msk.bf16.gmra.mxu1 %vm467_vm0, %v428_v19 }
 0x1c4   :  { %v501_v18 = vpop.f32.mrf.mxu1 }
 0x1c5   :  { %v502_v1 = vadd.f32 %v1406_v0, %v501_v18 }
 0x1c7   :  { %v541_v4 = vmax.f32 %v502_v1, 0.0 }
 0x1cc   :  { %v503_v41 = vpop.f32.mrf.mxu1 }
 0x1cd   :  { %v504_v2 = vadd.f32 %v1406_v0, %v503_v41 }
 0x1cf   :  { %v542_v56 = vmax.f32 %v504_v2, 0.0 }
 0x1d1   :  { %v558_v3 = vpack.c.bf16 %v542_v56, %v541_v4 }
 0x1d3   :  { %638 = vmatmul.bf16.vlgmr.msrb.gmra.mxu2 %v558_v3 }
 0x1d4   :  { %v506_v5 = vpop.f32.mrf.mxu1 }
 0x1d5   :  { %v507_v7 = vadd.f32 %v1406_v0, %v506_v5 }
 0x1d7   :  { %v543_v52 = vmax.f32 %v507_v7, 0.0 }
 0x1dc   :  { %v508_v15 = vpop.f32.mrf.mxu1 }
 0x1dd   :  { %v509_v8 = vadd.f32 %v1406_v0, %v508_v15 }
 0x1df   :  { %v544_v10 = vmax.f32 %v509_v8, 0.0 }
 0x1e0   :  { %v526_v59 = vpop.f32.mrf.mxu3 }
 0x1e1   :  { %v559_v36 = vpack.c.bf16 %v544_v10, %v543_v52  ;;  %v527_v18 = vadd.f32 %v1406_v0, %v526_v59 }
 0x1e3   :  { %643 = vmatmul.bf16.gmra.mxu2 %v559_v36  ;;  %v551_v41 = vmax.f32 %v527_v18, 0.0 }
 0x1e4   :  { %v511_v17 = vpop.f32.mrf.mxu1 }
 0x1e5   :  { %v512_v58 = vadd.f32 %v1406_v0, %v511_v17 }
 0x1e7   :  { %v545_v57 = vmax.f32 %v512_v58, 0.0 }
 0x1e8   :  { %v528_v63 = vpop.f32.mrf.mxu3 }
 0x1e9   :  { %v529_v61 = vadd.f32 %v1406_v0, %v528_v63 }
 0x1eb   :  { %v552_v1 = vmax.f32 %v529_v61, 0.0 }
 0x1ec   :  { %v513_v11 = vpop.f32.mrf.mxu1 }
 0x1ed   :  { %v514_v23 = vadd.f32 %v1406_v0, %v513_v11  ;;  %v563_v2 = vpack.c.bf16 %v552_v1, %v551_v41 }
 0x1ef   :  { %v546_v38 = vmax.f32 %v514_v23, 0.0 }
 0x1f0   :  { %v531_v14 = vpop.f32.mrf.mxu3 }
 0x1f1   :  { %v560_v24 = vpack.c.bf16 %v546_v38, %v545_v57  ;;  %v532_v3 = vadd.f32 %v1406_v0, %v531_v14 }
 0x1f3   :  { %648 = vmatmul.bf16.gmra.mxu2 %v560_v24  ;;  %v553_v15 = vmax.f32 %v532_v3, 0.0 }
 0x1f4   :  { %v516_v29 = vpop.f32.mrf.mxu1 }
 0x1f5   :  { %v517_v33 = vadd.f32 %v1406_v0, %v516_v29 }
 0x1f7   :  { %v547_v37 = vmax.f32 %v517_v33, 0.0 }
 0x1f8   :  { %v533_v4 = vpop.f32.mrf.mxu3 }
 0x1f9   :  { %v534_v56 = vadd.f32 %v1406_v0, %v533_v4 }
 0x1fb   :  { %v554_v7 = vmax.f32 %v534_v56, 0.0 }
 0x1fc   :  { %v518_v35 = vpop.f32.mrf.mxu1 }
 0x1fd   :  { %v519_v39 = vadd.f32 %v1406_v0, %v518_v35  ;;  %v564_v8 = vpack.c.bf16 %v554_v7, %v553_v15 }
 0x1ff   :  { %v548_v34 = vmax.f32 %v519_v39, 0.0 }
 0x200   :  { %v536_v5 = vpop.f32.mrf.mxu3 }
 0x201   :  { %v561_v50 = vpack.c.bf16 %v548_v34, %v547_v37  ;;  %v537_v36 = vadd.f32 %v1406_v0, %v536_v5 }
 0x203   :  { %653 = vmatmul.bf16.gmra.mxu2 %v561_v50  ;;  %v555_v58 = vmax.f32 %v537_v36, 0.0 }
 0x204   :  { %v521_v44 = vpop.f32.mrf.mxu1 }
 0x205   :  { %v522_v26 = vadd.f32 %v1406_v0, %v521_v44 }
 0x207   :  { %v549_v19 = vmax.f32 %v522_v26, 0.0 }
 0x208   :  { %v538_v52 = vpop.f32.mrf.mxu3 }
 0x209   :  { %v539_v10 = vadd.f32 %v1406_v0, %v538_v52 }
 0x20b   :  { %v556_v17 = vmax.f32 %v539_v10, 0.0 }
 0x20c   :  { %v523_v30 = vpop.f32.mrf.mxu1 }
 0x20d   :  { %v524_v32 = vadd.f32 %v1406_v0, %v523_v30  ;;  %v565_v11 = vpack.c.bf16 %v556_v17, %v555_v58 }
 0x20f   :  { %v550_v40 = vmax.f32 %v524_v32, 0.0 }
 0x211   :  { %v562_v47 = vpack.c.bf16 %v550_v40, %v549_v19 }
 0x213   :  { %658 = vmatmul.bf16.gmra.mxu2 %v562_v47 }
 0x223   :  { %663 = vmatmul.bf16.gmra.mxu2 %v563_v2 }
 0x233   :  { %668 = vmatmul.bf16.gmra.mxu2 %v564_v8 }
 0x243   :  { %673 = vmatmul.bf16.gmra.mxu2 %v565_v11 }
 0x256   :  { %v639_v23 = vpop.f32.mrf.mxu2 }
 0x257   :  { %v679_v58 = vmul.f32 %v639_v23, %v1908_v6  ;;  %v1392_v23 = vld [vmem:[%s2509_s6 + $0x30] sm:$0xff] }
 0x25e   :  { %v641_v57 = vpop.f32.mrf.mxu2 }
 0x25f   :  { %v680_v36 = vmul.f32 %v641_v57, %v1918_v13  ;;  %v1393_v57 = vld [vmem:[%s2509_s6 + $0x38] sm:$0xff] }
 0x260   :  { %876 = vmatpush.bf16.msrb.mxu1 %v1393_v57 }
 0x261   :  { %v695_v11 = vpack.c.bf16 %v680_v36, %v679_v58 }
 0x264   :  { %877 = vmatpush.bf16.msrb.mxu1 %v1392_v23 }
 0x266   :  { %v644_v38 = vpop.f32.mrf.mxu2 }
 0x267   :  { %v681_v10 = vmul.f32 %v644_v38, %v1901_v27  ;;  %v1391_v38 = vld [vmem:[%s2509_s6 + $0x28] sm:$0xff] }
 0x268   :  { %878 = vmatpush.bf16.msrb.mxu1 %v1391_v38 }
 0x26e   :  { %v646_v24 = vpop.f32.mrf.mxu2 }
 0x26f   :  { %v682_v8 = vmul.f32 %v646_v24, %v1891_v49  ;;  %v1390_v24 = vld [vmem:[%s2509_s6 + $0x20] sm:$0xff] }
 0x270   :  { %879 = vmatpush.bf16.msrb.mxu1 %v1390_v24 }
 0x271   :  { %v696_v17 = vpack.c.bf16 %v682_v8, %v681_v10 }
 0x276   :  { %v649_v29 = vpop.f32.mrf.mxu2 }
 0x277   :  { %v683_v15 = vmul.f32 %v649_v29, %v1865_v28  ;;  %v1389_v29 = vld [vmem:[%s2509_s6 + $0x18] sm:$0xff] }
 0x278   :  { %880 = vmatpush.bf16.msrb.mxu1 %v1389_v29 }
 0x27e   :  { %v651_v33 = vpop.f32.mrf.mxu2 }
 0x27f   :  { %v2088_v5 = vmul.f32 %v651_v33, %v1862_v22  ;;  %v1388_v33 = vld [vmem:[%s2509_s6 + $0x10] sm:$0xff] }
 0x280   :  { %881 = vmatpush.bf16.msrb.mxu1 %v1388_v33 }
 0x281   :  { %v697_v52 = vpack.c.bf16 %v2088_v5, %v683_v15 }
 0x286   :  { %v654_v35 = vpop.f32.mrf.mxu2 }
 0x287   :  { %v2085_v3 = vmul.f32 %v654_v35, %v1817_v31  ;;  %v1387_v35 = vld [vmem:[%s2509_s6 + $0x8] sm:$0xff] }
 0x288   :  { %882 = vmatpush.bf16.msrb.mxu1 %v1387_v35 }
 0x28e   :  { %v656_v39 = vpop.f32.mrf.mxu2 }
 0x28f   :  { %v2080_v4 = vmul.f32 %v656_v39, %v1830_v43  ;;  %v1386_v39 = vld [vmem:[%s2509_s6] sm:$0xff] }
 0x290   :  { %883 = vmatpush.bf16.msrb.mxu1 %v1386_v39 }
 0x291   :  { %v698_v7 = vpack.c.bf16 %v2080_v4, %v2085_v3 }
 0x296   :  { %v659_v37 = vpop.f32.mrf.mxu2 }
 0x297   :  { %v2077_v2 = vmul.f32 %v659_v37, %v1797_v20 }
 0x29e   :  { %v661_v34 = vpop.f32.mrf.mxu2 }
 0x29f   :  { %v2072_v1 = vmul.f32 %v661_v34, %v1781_v9 }
 0x2a1   :  { %v699_v56 = vpack.c.bf16 %v2072_v1, %v2077_v2 }
 0x2a6   :  { %v664_v50 = vpop.f32.mrf.mxu2 }
 0x2a7   :  { %v2069_v18 = vmul.f32 %v664_v50, %v1668_v21 }
 0x2ae   :  { %v666_v59 = vpop.f32.mrf.mxu2 }
 0x2af   :  { %v2064_v14 = vmul.f32 %v666_v59, %v1742_v51  ;;  %v2134_v59 = vld [vmem:[%s2508_s5] ss:$0 sm:$0xff] }
 0x2b1   :  { %v700_v41 = vpack.c.bf16 %v2064_v14, %v2069_v18 }
 0x2b6   :  { %v669_v44 = vpop.f32.mrf.mxu2 }
 0x2b7   :  { %v2061_v47 = vmul.f32 %v669_v44, %v1656_v16 }
 0x2be   :  { %v671_v26 = vpop.f32.mrf.mxu2 }
 0x2bf   :  { %v2056_v19 = vmul.f32 %v671_v26, %v1722_v42 }
 0x2c1   :  { %v701_v61 = vpack.c.bf16 %v2056_v19, %v2061_v47 }
 0x2c6   :  { %v674_v30 = vpop.f32.mrf.mxu2 }
 0x2c7   :  { %v2050_v32 = vmul.f32 %v674_v30, %v1646_v12 }
 0x2ce   :  { %v676_v0 = vpop.f32.mrf.mxu2 }
 0x2cf   :  { %v2053_v63 = vmul.f32 %v676_v0, %v1682_v25 }
 0x2d1   :  { %v702_v40 = vpack.c.bf16 %v2053_v63, %v2050_v32 }
 0x2d3   :  { %703 = vmatpush.bf16.msrb.mxu3 %v702_v40 }
 0x2d7   :  { %704 = vmatpush.bf16.msrb.mxu3 %v701_v61 }
 0x2db   :  { %705 = vmatpush.bf16.msrb.mxu3 %v700_v41 }
 0x2df   :  { %706 = vmatpush.bf16.msrb.mxu3 %v699_v56 }
 0x2e3   :  { %707 = vmatpush.bf16.msrb.mxu3 %v698_v7 }
 0x2e7   :  { %708 = vmatpush.bf16.msrb.mxu3 %v697_v52 }
 0x2eb   :  { %709 = vmatpush.bf16.msrb.mxu3 %v696_v17 }
 0x2ef   :  { %710 = vmatpush.bf16.msrb.mxu3 %v695_v11 }
 0x2f2   :  { %711 = vmatmul.bf16.vlgmr.msrb.gmra.mxu3 %v1925_v45 }
 0x302   :  { %716 = vmatmul.bf16.gmra.mxu3 %v1937_v48 }
 0x312   :  { %721 = vmatmul.bf16.gmra.mxu3 %v1949_v54 }
 0x322   :  { %726 = vmatmul.bf16.gmra.mxu3 %v1961_v60 }
 0x332   :  { %731 = vmatmul.bf16.gmra.mxu3 %v1930_v46 }
 0x342   :  { %736 = vmatmul.bf16.gmra.mxu3 %v1942_v53 }
 0x352   :  { %741 = vmatmul.bf16.gmra.mxu3 %v1954_v55 }
 0x362   :  { %746 = vmatmul.bf16.gmra.mxu3 %v1966_v62 }
 0x375   :  { %v712_v37 = vpop.f32.mrf.mxu3 }
 0x376   :  { %v713_v34 = vadd.f32 %v712_v37, %v679_v58 }
 0x378   :  { %v752_v50 = vmul.f32 %v713_v34, %v1908_v6 }
 0x37a   :  { %v771_v30 = vadd.f32 %v2134_v59, %v752_v50 }
 0x37c   :  { %v787_v61 = vmax.f32 %v771_v30, 0.0 }
 0x37d   :  { %v714_v44 = vpop.f32.mrf.mxu3 }
 0x37e   :  { %v715_v26 = vadd.f32 %v714_v44, %v680_v36 }
 0x380   :  { %v753_v0 = vmul.f32 %v715_v26, %v1918_v13 }
 0x382   :  { %v772_v40 = vadd.f32 %v2134_v59, %v753_v0 }
 0x384   :  { %v788_v41 = vmax.f32 %v772_v40, 0.0 }
 0x385   :  { %v717_v56 = vpop.f32.mrf.mxu3 }
 0x386   :  { %v804_v7 = vpack.c.bf16 %v788_v41, %v787_v61  ;;  %v718_v52 = vadd.f32 %v717_v56, %v681_v10 }
 0x388   :  { %884 = vmatmul.bf16.vlgmr.msrb.gmra.mxu1 %v804_v7  ;;  %v754_v17 = vmul.f32 %v718_v52, %v1901_v27 }
 0x38a   :  { %v773_v36 = vadd.f32 %v2134_v59, %v754_v17 }
 0x38c   :  { %v789_v38 = vmax.f32 %v773_v36, 0.0 }
 0x38d   :  { %v719_v58 = vpop.f32.mrf.mxu3 }
 0x38e   :  { %v720_v11 = vadd.f32 %v719_v58, %v682_v8 }
 0x390   :  { %v755_v57 = vmul.f32 %v720_v11, %v1891_v49 }
 0x392   :  { %v774_v23 = vadd.f32 %v2134_v59, %v755_v57 }
 0x394   :  { %v790_v24 = vmax.f32 %v774_v23, 0.0 }
 0x395   :  { %v722_v29 = vpop.f32.mrf.mxu3 }
 0x396   :  { %v805_v33 = vpack.c.bf16 %v790_v24, %v789_v38  ;;  %v723_v35 = vadd.f32 %v722_v29, %v683_v15 }
 0x398   :  { %889 = vmatmul.bf16.gmra.mxu1 %v805_v33  ;;  %v756_v39 = vmul.f32 %v723_v35, %v1865_v28 }
 0x39a   :  { %v775_v8 = vadd.f32 %v2134_v59, %v756_v39 }
 0x39c   :  { %v791_v44 = vmax.f32 %v775_v8, 0.0 }
 0x39d   :  { %v724_v10 = vpop.f32.mrf.mxu3 }
 0x39e   :  { %v725_v37 = vadd.f32 %v724_v10, %v2088_v5 }
 0x3a0   :  { %v757_v34 = vmul.f32 %v725_v37, %v1862_v22 }
 0x3a2   :  { %v776_v50 = vadd.f32 %v2134_v59, %v757_v34 }
 0x3a4   :  { %v792_v26 = vmax.f32 %v776_v50, 0.0 }
 0x3a5   :  { %v727_v30 = vpop.f32.mrf.mxu3 }
 0x3a6   :  { %v806_v0 = vpack.c.bf16 %v792_v26, %v791_v44  ;;  %v728_v40 = vadd.f32 %v727_v30, %v2085_v3 }
 0x3a8   :  { %894 = vmatmul.bf16.gmra.mxu1 %v806_v0  ;;  %v758_v15 = vmul.f32 %v728_v40, %v1817_v31 }
 0x3aa   :  { %v777_v56 = vadd.f32 %v2134_v59, %v758_v15 }
 0x3ac   :  { %v793_v52 = vmax.f32 %v777_v56, 0.0 }
 0x3ad   :  { %v729_v61 = vpop.f32.mrf.mxu3 }
 0x3ae   :  { %v730_v41 = vadd.f32 %v729_v61, %v2080_v4 }
 0x3b0   :  { %v759_v5 = vmul.f32 %v730_v41, %v1830_v43 }
 0x3b2   :  { %v778_v7 = vadd.f32 %v2134_v59, %v759_v5 }
 0x3b4   :  { %v794_v17 = vmax.f32 %v778_v7, 0.0 }
 0x3b5   :  { %v732_v58 = vpop.f32.mrf.mxu3 }
 0x3b6   :  { %v807_v11 = vpack.c.bf16 %v794_v17, %v793_v52  ;;  %v733_v57 = vadd.f32 %v732_v58, %v2077_v2 }
 0x3b8   :  { %899 = vmatmul.bf16.gmra.mxu1 %v807_v11  ;;  %v760_v3 = vmul.f32 %v733_v57, %v1797_v20 }
 0x3ba   :  { %v779_v38 = vadd.f32 %v2134_v59, %v760_v3 }
 0x3bc   :  { %v795_v29 = vmax.f32 %v779_v38, 0.0 }
 0x3bd   :  { %v734_v36 = vpop.f32.mrf.mxu3 }
 0x3be   :  { %v735_v23 = vadd.f32 %v734_v36, %v2072_v1 }
 0x3c0   :  { %v761_v4 = vmul.f32 %v735_v23, %v1781_v9 }
 0x3c2   :  { %v780_v24 = vadd.f32 %v2134_v59, %v761_v4 }
 0x3c4   :  { %v796_v33 = vmax.f32 %v780_v24, 0.0 }
 0x3c5   :  { %v737_v35 = vpop.f32.mrf.mxu3 }
 0x3c6   :  { %v808_v39 = vpack.c.bf16 %v796_v33, %v795_v29  ;;  %v738_v10 = vadd.f32 %v737_v35, %v2069_v18 }
 0x3c8   :  { %904 = vmatmul.bf16.gmra.mxu1 %v808_v39  ;;  %v762_v2 = vmul.f32 %v738_v10, %v1668_v21 }
 0x3ca   :  { %v781_v8 = vadd.f32 %v2134_v59, %v762_v2 }
 0x3cc   :  { %v797_v44 = vmax.f32 %v781_v8, 0.0 }
 0x3cd   :  { %v739_v37 = vpop.f32.mrf.mxu3 }
 0x3ce   :  { %v740_v34 = vadd.f32 %v739_v37, %v2064_v14 }
 0x3d0   :  { %v763_v1 = vmul.f32 %v740_v34, %v1742_v51 }
 0x3d2   :  { %v782_v50 = vadd.f32 %v2134_v59, %v763_v1 }
 0x3d4   :  { %v798_v26 = vmax.f32 %v782_v50, 0.0 }
 0x3d5   :  { %v742_v30 = vpop.f32.mrf.mxu3 }
 0x3d6   :  { %v809_v0 = vpack.c.bf16 %v798_v26, %v797_v44  ;;  %v743_v40 = vadd.f32 %v742_v30, %v2061_v47 }
 0x3d8   :  { %909 = vmatmul.bf16.gmra.mxu1 %v809_v0  ;;  %v764_v18 = vmul.f32 %v743_v40, %v1656_v16 }
 0x3da   :  { %v783_v41 = vadd.f32 %v2134_v59, %v764_v18 }
 0x3dc   :  { %v799_v56 = vmax.f32 %v783_v41, 0.0 }
 0x3dd   :  { %v744_v15 = vpop.f32.mrf.mxu3 }
 0x3de   :  { %v745_v61 = vadd.f32 %v744_v15, %v2056_v19 }
 0x3e0   :  { %v765_v14 = vmul.f32 %v745_v61, %v1722_v42 }
 0x3e2   :  { %v784_v5 = vadd.f32 %v2134_v59, %v765_v14 }
 0x3e4   :  { %v800_v7 = vmax.f32 %v784_v5, 0.0 }
 0x3e5   :  { %v747_v52 = vpop.f32.mrf.mxu3 }
 0x3e6   :  { %v810_v17 = vpack.c.bf16 %v800_v7, %v799_v56  ;;  %v748_v58 = vadd.f32 %v747_v52, %v2050_v32 }
 0x3e8   :  { %914 = vmatmul.bf16.gmra.mxu1 %v810_v17  ;;  %v766_v47 = vmul.f32 %v748_v58, %v1646_v12 }
 0x3ea   :  { %v785_v19 = vadd.f32 %v2134_v59, %v766_v47 }
 0x3ec   :  { %v801_v23 = vmax.f32 %v785_v19, 0.0 }
 0x3ed   :  { %v749_v11 = vpop.f32.mrf.mxu3 }
 0x3ee   :  { %v750_v57 = vadd.f32 %v749_v11, %v2053_v63 }
 0x3f0   :  { %v767_v3 = vmul.f32 %v750_v57, %v1682_v25 }
 0x3f2   :  { %v786_v36 = vadd.f32 %v2134_v59, %v767_v3 }
 0x3f4   :  { %v802_v4 = vmax.f32 %v786_v36, 0.0 }
 0x3f6   :  { %v811_v38 = vpack.c.bf16 %v802_v4, %v801_v23 }
 0x3f8   :  { %919 = vmatmul.bf16.gmra.mxu1 %v811_v38 }
 0x405   :  { %v885_v24 = vpop.f32.mrf.mxu1 }
 0x406   :  { %v925_v4 = vmul.f32 %v885_v24, %v1908_v6 }
 0x40d   :  { %v887_v29 = vpop.f32.mrf.mxu1 }
 0x40e   :  { %v926_v36 = vmul.f32 %v887_v29, %v1918_v13 }
 0x410   :  { %v941_v38 = vpack.c.bf16 %v926_v36, %v925_v4 }
 0x415   :  { %v890_v33 = vpop.f32.mrf.mxu1 }
 0x416   :  { %v927_v3 = vmul.f32 %v890_v33, %v1901_v27 }
 0x41d   :  { %v892_v32 = vpop.f32.mrf.mxu1 }
 0x41e   :  { %v928_v57 = vmul.f32 %v892_v32, %v1891_v49 }
 0x420   :  { %v942_v23 = vpack.c.bf16 %v928_v57, %v927_v3 }
 0x425   :  { %v895_v35 = vpop.f32.mrf.mxu1 }
 0x426   :  { %v929_v11 = vmul.f32 %v895_v35, %v1865_v28 }
 0x42d   :  { %v897_v39 = vpop.f32.mrf.mxu1 }
 0x42e   :  { %v930_v58 = vmul.f32 %v897_v39, %v1862_v22 }
 0x430   :  { %v943_v19 = vpack.c.bf16 %v930_v58, %v929_v11 }
 0x435   :  { %v900_v10 = vpop.f32.mrf.mxu1 }
 0x436   :  { %v2214_v17 = vmul.f32 %v900_v10, %v1817_v31 }
 0x43d   :  { %v902_v2 = vpop.f32.mrf.mxu1 }
 0x43e   :  { %v2209_v7 = vmul.f32 %v902_v2, %v1830_v43 }
 0x440   :  { %v944_v47 = vpack.c.bf16 %v2209_v7, %v2214_v17 }
 0x445   :  { %v905_v37 = vpop.f32.mrf.mxu1 }
 0x446   :  { %v2206_v56 = vmul.f32 %v905_v37, %v1797_v20 }
 0x44d   :  { %v907_v63 = vpop.f32.mrf.mxu1 }
 0x44e   :  { %v2201_v41 = vmul.f32 %v907_v63, %v1781_v9 }
 0x450   :  { %v945_v52 = vpack.c.bf16 %v2201_v41, %v2206_v56 }
 0x455   :  { %v910_v34 = vpop.f32.mrf.mxu1 }
 0x456   :  { %v2198_v14 = vmul.f32 %v910_v34, %v1668_v21 }
 0x45d   :  { %v912_v1 = vpop.f32.mrf.mxu1 }
 0x45e   :  { %v2193_v15 = vmul.f32 %v912_v1, %v1742_v51 }
 0x460   :  { %v946_v5 = vpack.c.bf16 %v2193_v15, %v2198_v14 }
 0x465   :  { %v915_v8 = vpop.f32.mrf.mxu1 }
 0x466   :  { %v2190_v18 = vmul.f32 %v915_v8, %v1656_v16 }
 0x46d   :  { %v917_v50 = vpop.f32.mrf.mxu1 }
 0x46e   :  { %v2185_v0 = vmul.f32 %v917_v50, %v1722_v42 }
 0x470   :  { %v947_v61 = vpack.c.bf16 %v2185_v0, %v2190_v18 }
 0x475   :  { %v920_v44 = vpop.f32.mrf.mxu1 }
 0x476   :  { %v2179_v26 = vmul.f32 %v920_v44, %v1646_v12 }
 0x47d   :  { %v922_v59 = vpop.f32.mrf.mxu1 }
 0x47e   :  { %v2182_v30 = vmul.f32 %v922_v59, %v1682_v25 }
 0x480   :  { %v948_v40 = vpack.c.bf16 %v2182_v30, %v2179_v26 }
 0x482   :  { %949 = vmatpush.bf16.msrb.mxu0 %v948_v40 }
 0x486   :  { %950 = vmatpush.bf16.msrb.mxu0 %v947_v61 }
 0x48a   :  { %951 = vmatpush.bf16.msrb.mxu0 %v946_v5 }
 0x48e   :  { %952 = vmatpush.bf16.msrb.mxu0 %v945_v52 }
 0x492   :  { %953 = vmatpush.bf16.msrb.mxu0 %v944_v47 }
 0x496   :  { %954 = vmatpush.bf16.msrb.mxu0 %v943_v19 }
 0x49a   :  { %955 = vmatpush.bf16.msrb.mxu0 %v942_v23 }
 0x49e   :  { %956 = vmatpush.bf16.msrb.mxu0 %v941_v38 }
 0x4a1   :  { %957 = vmatmul.bf16.vlgmr.msrb.gmra.mxu0 %v1925_v45  ;;  %v2235_v45 = vld [vmem:[%s2510_s7] ss:$0 sm:$0xff] }
 0x4b1   :  { %962 = vmatmul.bf16.gmra.mxu0 %v1937_v48 }
 0x4c1   :  { %967 = vmatmul.bf16.gmra.mxu0 %v1949_v54 }
 0x4d1   :  { %972 = vmatmul.bf16.gmra.mxu0 %v1961_v60 }
 0x4e1   :  { %977 = vmatmul.bf16.gmra.mxu0 %v1930_v46 }
 0x4f1   :  { %982 = vmatmul.bf16.gmra.mxu0 %v1942_v53 }
 0x501   :  { %987 = vmatmul.bf16.gmra.mxu0 %v1954_v55 }
 0x511   :  { %992 = vmatmul.bf16.gmra.mxu0 %v1966_v62 }
 0x51e   :  { %v958_v24 = vpop.f32.mrf.mxu0 }
 0x51f   :  { %v959_v29 = vadd.f32 %v958_v24, %v925_v4 }
 0x521   :  { %v998_v48 = vmul.f32 %v959_v29, %v1908_v6 }
 0x523   :  { %v2239_v54 = vadd.f32 %v2235_v45, %v998_v48 }
 0x525   :  { %v1034_v46 = vsel %vm1033_vm1, %v2239_v54, -inf }
 0x526   :  { %v960_v53 = vpop.f32.mrf.mxu0  ;;  %1035 = vmax.xlane.f32.xlu1 %v1034_v46 }
 0x527   :  { %v961_v55 = vadd.f32 %v960_v53, %v926_v36 }
 0x529   :  { %v999_v60 = vmul.f32 %v961_v55, %v1918_v13 }
 0x52b   :  { %v2245_v62 = vadd.f32 %v2235_v45, %v999_v60 }
 0x52d   :  { %v1037_v33 = vsel %vm1033_vm1, %v2245_v62, -inf }
 0x52e   :  { %v963_v32 = vpop.f32.mrf.mxu0  ;;  %1038 = vmax.xlane.f32.xlu2 %v1037_v33 }
 0x52f   :  { %v964_v6 = vadd.f32 %v963_v32, %v927_v3 }
 0x531   :  { %v1000_v35 = vmul.f32 %v964_v6, %v1901_v27 }
 0x533   :  { %v2251_v39 = vadd.f32 %v2235_v45, %v1000_v35 }
 0x535   :  { %v1040_v10 = vsel %vm1033_vm1, %v2251_v39, -inf }
 0x536   :  { %v965_v2 = vpop.f32.mrf.mxu0  ;;  %1041 = vmax.xlane.f32.xlu0 %v1040_v10 }
 0x537   :  { %v966_v13 = vadd.f32 %v965_v2, %v928_v57 }
 0x539   :  { %v1001_v37 = vmul.f32 %v966_v13, %v1891_v49 }
 0x53b   :  { %v2257_v63 = vadd.f32 %v2235_v45, %v1001_v37 }
 0x53d   :  { %v1043_v34 = vsel %vm1033_vm1, %v2257_v63, -inf }
 0x53e   :  { %v968_v1 = vpop.f32.mrf.mxu0  ;;  %1044 = vmax.xlane.f32.xlu1 %v1043_v34 }
 0x53f   :  { %v969_v27 = vadd.f32 %v968_v1, %v929_v11 }
 0x541   :  { %v1002_v8 = vmul.f32 %v969_v27, %v1865_v28 }
 0x543   :  { %v2263_v50 = vadd.f32 %v2235_v45, %v1002_v8 }
 0x545   :  { %v1046_v44 = vsel %vm1033_vm1, %v2263_v50, -inf }
 0x546   :  { %v970_v59 = vpop.f32.mrf.mxu0  ;;  %1047 = vmax.xlane.f32.xlu2 %v1046_v44 }
 0x547   :  { %v971_v49 = vadd.f32 %v970_v59, %v930_v58 }
 0x549   :  { %v1003_v40 = vmul.f32 %v971_v49, %v1862_v22 }
 0x54b   :  { %v2269_v61 = vadd.f32 %v2235_v45, %v1003_v40 }
 0x54d   :  { %v1049_v5 = vsel %vm1033_vm1, %v2269_v61, -inf }
 0x54e   :  { %v973_v52 = vpop.f32.mrf.mxu0  ;;  %1050 = vmax.xlane.f32.xlu0 %v1049_v5 }
 0x54f   :  { %v974_v28 = vadd.f32 %v973_v52, %v2214_v17 }
 0x551   :  { %v1004_v47 = vmul.f32 %v974_v28, %v1817_v31 }
 0x553   :  { %v2276_v11 = vadd.f32 %v2235_v45, %v1004_v47 }
 0x555   :  { %v1052_v58 = vsel %vm1033_vm1, %v2276_v11, -inf }
 0x556   :  { %v975_v57 = vpop.f32.mrf.mxu0  ;;  %1053 = vmax.xlane.f32.xlu1 %v1052_v58 }
 0x557   :  { %v976_v22 = vadd.f32 %v975_v57, %v2209_v7 }
 0x559   :  { %v1005_v19 = vmul.f32 %v976_v22, %v1830_v43 }
 0x55b   :  { %v2283_v3 = vadd.f32 %v2235_v45, %v1005_v19 }
 0x55d   :  { %v1055_v17 = vsel %vm1033_vm1, %v2283_v3, -inf }
 0x55e   :  { %v978_v36 = vpop.f32.mrf.mxu0  ;;  %1056 = vmax.xlane.f32.xlu2 %v1055_v17 }
 0x55f   :  { %v979_v31 = vadd.f32 %v978_v36, %v2206_v56 }
 0x561   :  { %v1006_v23 = vmul.f32 %v979_v31, %v1797_v20 }
 0x563   :  { %v2290_v4 = vadd.f32 %v2235_v45, %v1006_v23 }
 0x565   :  { %v1058_v7 = vsel %vm1033_vm1, %v2290_v4, -inf }
 0x566   :  { %v980_v38 = vpop.f32.mrf.mxu0  ;;  %1059 = vmax.xlane.f32.xlu0 %v1058_v7 }
 0x567   :  { %v981_v43 = vadd.f32 %v980_v38, %v2201_v41 }
 0x569   :  { %v1007_v24 = vmul.f32 %v981_v43, %v1781_v9 }
 0x56b   :  { %v2297_v29 = vadd.f32 %v2235_v45, %v1007_v24 }
 0x56d   :  { %v1061_v56 = vsel %vm1033_vm1, %v2297_v29, -inf }
 0x56e   :  { %v983_v48 = vpop.f32.mrf.mxu0  ;;  %1062 = vmax.xlane.f32.xlu1 %v1061_v56 }
 0x56f   :  { %v984_v20 = vadd.f32 %v983_v48, %v2198_v14 }
 0x571   :  { %v1008_v46 = vmul.f32 %v984_v20, %v1668_v21 }
 0x573   :  { %v2304_v53 = vadd.f32 %v2235_v45, %v1008_v46 }
 0x575   :  { %v1064_v41 = vsel %vm1033_vm1, %v2304_v53, -inf }
 0x576   :  { %v985_v55 = vpop.f32.mrf.mxu0  ;;  %1065 = vmax.xlane.f32.xlu2 %v1064_v41 }
 0x577   :  { %v986_v9 = vadd.f32 %v985_v55, %v2193_v15 }
 0x579   :  { %v1009_v60 = vmul.f32 %v986_v9, %v1742_v51 }
 0x57b   :  { %v2311_v33 = vadd.f32 %v2235_v45, %v1009_v60 }
 0x57d   :  { %v1067_v14 = vsel %vm1033_vm1, %v2311_v33, -inf }
 0x57e   :  { %v988_v32 = vpop.f32.mrf.mxu0  ;;  %1068 = vmax.xlane.f32.xlu0 %v1067_v14 }
 0x57f   :  { %v989_v21 = vadd.f32 %v988_v32, %v2190_v18 }
 0x581   :  { %v1010_v6 = vmul.f32 %v989_v21, %v1656_v16 }
 0x583   :  { %v2318_v35 = vadd.f32 %v2235_v45, %v1010_v6 }
 0x585   :  { %v1070_v15 = vsel %vm1033_vm1, %v2318_v35, -inf }
 0x586   :  { %v990_v10 = vpop.f32.mrf.mxu0  ;;  %1071 = vmax.xlane.f32.xlu1 %v1070_v15 }
 0x587   :  { %v991_v51 = vadd.f32 %v990_v10, %v2185_v0 }
 0x589   :  { %v1011_v2 = vmul.f32 %v991_v51, %v1722_v42 }
 0x58b   :  { %v2325_v13 = vadd.f32 %v2235_v45, %v1011_v2 }
 0x58d   :  { %v1073_v18 = vsel %vm1033_vm1, %v2325_v13, -inf }
 0x58e   :  { %v993_v37 = vpop.f32.mrf.mxu0  ;;  %1074 = vmax.xlane.f32.xlu2 %v1073_v18 }
 0x58f   :  { %v994_v16 = vadd.f32 %v993_v37, %v2179_v26 }
 0x591   :  { %v1012_v34 = vmul.f32 %v994_v16, %v1646_v12 }
 0x593   :  { %v2332_v1 = vadd.f32 %v2235_v45, %v1012_v34 }
 0x595   :  { %v1076_v0 = vsel %vm1033_vm1, %v2332_v1, -inf }
 0x596   :  { %v995_v27 = vpop.f32.mrf.mxu0  ;;  %1077 = vmax.xlane.f32.xlu0 %v1076_v0 }
 0x597   :  { %v996_v42 = vadd.f32 %v995_v27, %v2182_v30 }
 0x599   :  { %v1013_v8 = vmul.f32 %v996_v42, %v1682_v25  ;;  %v1036_v44 = vpop.xlane.xlu1 %1035 }
 0x59a   :  { %v2339_v59 = vsub.f32 %v2239_v54, %v1036_v44 }
 0x59b   :  { %v2342_v26 = vadd.f32 %v2235_v45, %v1013_v8 }
 0x59c   :  { %v1098_v12 = vmul.f32 1.442695, %v2339_v59 }
 0x59d   :  { %v1079_v49 = vsel %vm1033_vm1, %v2342_v26, -inf }
 0x59e   :  { %1441 = vpow2.f32 %v1098_v12  ;;  %1080 = vmax.xlane.f32.xlu1 %v1079_v49 }
 0x5a1   :  { %v1039_v40 = vpop.xlane.xlu2 %1038 }
 0x5a2   :  { %v2348_v5 = vsub.f32 %v2245_v62, %v1039_v40 }
 0x5a4   :  { %v1442_v30 = vpop.eup %1441  ;;  %v1100_v25 = vmul.f32 1.442695, %v2348_v5 }
 0x5a5   :  { %v1130_v54 = vsel %vm1033_vm1, %v1442_v30, 0.0 }
 0x5a6   :  { %1443 = vpow2.f32 %v1100_v25  ;;  %1131 = vadd.xlane.f32.xlu2 %v1130_v54 }
 0x5a9   :  { %v1042_v45 = vpop.xlane.xlu0 %1041 }
 0x5aa   :  { %v2353_v52 = vsub.f32 %v2251_v39, %v1042_v45 }
 0x5ac   :  { %v1444_v28 = vpop.eup %1443  ;;  %v1102_v47 = vmul.f32 1.442695, %v2353_v52 }
 0x5ad   :  { %v1133_v58 = vsel %vm1033_vm1, %v1444_v28, 0.0 }
 0x5ae   :  { %1445 = vpow2.f32 %v1102_v47  ;;  %1134 = vadd.xlane.f32.xlu0 %v1133_v58 }
 0x5b1   :  { %v1045_v62 = vpop.xlane.xlu1 %1044 }
 0x5b2   :  { %v2358_v57 = vsub.f32 %v2257_v63, %v1045_v62 }
 0x5b4   :  { %v1446_v22 = vpop.eup %1445  ;;  %v1104_v19 = vmul.f32 1.442695, %v2358_v57 }
 0x5b5   :  { %v1136_v17 = vsel %vm1033_vm1, %v1446_v22, 0.0 }
 0x5b6   :  { %1447 = vpow2.f32 %v1104_v19  ;;  %1137 = vadd.xlane.f32.xlu1 %v1136_v17 }
 0x5b9   :  { %v1048_v39 = vpop.xlane.xlu2 %1047 }
 0x5ba   :  { %v2363_v36 = vsub.f32 %v2263_v50, %v1048_v39 }
 0x5bc   :  { %v1448_v31 = vpop.eup %1447  ;;  %v1106_v23 = vmul.f32 1.442695, %v2363_v36 }
 0x5bd   :  { %v1139_v7 = vsel %vm1033_vm1, %v1448_v31, 0.0 }
 0x5be   :  { %1449 = vpow2.f32 %v1106_v23  ;;  %1140 = vadd.xlane.f32.xlu2 %v1139_v7 }
 0x5c1   :  { %v1051_v63 = vpop.xlane.xlu0 %1050 }
 0x5c2   :  { %v2368_v38 = vsub.f32 %v2269_v61, %v1051_v63 }
 0x5c4   :  { %v1450_v43 = vpop.eup %1449  ;;  %v1108_v24 = vmul.f32 1.442695, %v2368_v38 }
 0x5c5   :  { %v1142_v56 = vsel %vm1033_vm1, %v1450_v43, 0.0 }
 0x5c6   :  { %1451 = vpow2.f32 %v1108_v24  ;;  %1143 = vadd.xlane.f32.xlu0 %v1142_v56 }
 0x5c9   :  { %v1054_v50 = vpop.xlane.xlu1 %1053 }
 0x5ca   :  { %v2373_v48 = vsub.f32 %v2276_v11, %v1054_v50 }
 0x5cc   :  { %v1452_v20 = vpop.eup %1451  ;;  %v1110_v46 = vmul.f32 1.442695, %v2373_v48 }
 0x5cd   :  { %v1145_v41 = vsel %vm1033_vm1, %v1452_v20, 0.0 }
 0x5ce   :  { %1453 = vpow2.f32 %v1110_v46  ;;  %1146 = vadd.xlane.f32.xlu1 %v1145_v41 }
 0x5d1   :  { %v1057_v61 = vpop.xlane.xlu2 %1056 }
 0x5d2   :  { %v2378_v55 = vsub.f32 %v2283_v3, %v1057_v61 }
 0x5d4   :  { %v1454_v9 = vpop.eup %1453  ;;  %v1112_v60 = vmul.f32 1.442695, %v2378_v55 }
 0x5d5   :  { %v1148_v14 = vsel %vm1033_vm1, %v1454_v9, 0.0 }
 0x5d6   :  { %1455 = vpow2.f32 %v1112_v60  ;;  %1149 = vadd.xlane.f32.xlu2 %v1148_v14 }
 0x5d9   :  { %v1060_v11 = vpop.xlane.xlu0 %1059 }
 0x5da   :  { %v2383_v32 = vsub.f32 %v2290_v4, %v1060_v11 }
 0x5dc   :  { %v1456_v21 = vpop.eup %1455  ;;  %v1114_v6 = vmul.f32 1.442695, %v2383_v32 }
 0x5dd   :  { %v1151_v15 = vsel %vm1033_vm1, %v1456_v21, 0.0 }
 0x5de   :  { %1457 = vpow2.f32 %v1114_v6  ;;  %1152 = vadd.xlane.f32.xlu0 %v1151_v15 }
 0x5e1   :  { %v1063_v3 = vpop.xlane.xlu1 %1062 }
 0x5e2   :  { %v2388_v10 = vsub.f32 %v2297_v29, %v1063_v3 }
 0x5e4   :  { %v1458_v51 = vpop.eup %1457  ;;  %v1116_v2 = vmul.f32 1.442695, %v2388_v10 }
 0x5e5   :  { %v1154_v18 = vsel %vm1033_vm1, %v1458_v51, 0.0 }
 0x5e6   :  { %1459 = vpow2.f32 %v1116_v2  ;;  %1155 = vadd.xlane.f32.xlu1 %v1154_v18 }
 0x5e9   :  { %v1066_v4 = vpop.xlane.xlu2 %1065 }
 0x5ea   :  { %v2393_v37 = vsub.f32 %v2304_v53, %v1066_v4 }
 0x5ec   :  { %v1460_v16 = vpop.eup %1459  ;;  %v1118_v34 = vmul.f32 1.442695, %v2393_v37 }
 0x5ed   :  { %v1157_v0 = vsel %vm1033_vm1, %v1460_v16, 0.0 }
 0x5ee   :  { %1461 = vpow2.f32 %v1118_v34  ;;  %1158 = vadd.xlane.f32.xlu2 %v1157_v0 }
 0x5f1   :  { %v1069_v29 = vpop.xlane.xlu0 %1068 }
 0x5f2   :  { %v2398_v27 = vsub.f32 %v2311_v33, %v1069_v29 }
 0x5f4   :  { %v1462_v42 = vpop.eup %1461  ;;  %v1120_v8 = vmul.f32 1.442695, %v2398_v27 }
 0x5f5   :  { %v1160_v44 = vsel %vm1033_vm1, %v1462_v42, 0.0 }
 0x5f6   :  { %1463 = vpow2.f32 %v1120_v8  ;;  %1161 = vadd.xlane.f32.xlu0 %v1160_v44 }
 0x5f9   :  { %v1072_v53 = vpop.xlane.xlu1 %1071 }
 0x5fa   :  { %v2403_v12 = vsub.f32 %v2318_v35, %v1072_v53 }
 0x5fc   :  { %v1464_v49 = vpop.eup %1463  ;;  %v1122_v40 = vmul.f32 1.442695, %v2403_v12 }
 0x5fd   :  { %v1163_v30 = vsel %vm1033_vm1, %v1464_v49, 0.0 }
 0x5fe   :  { %1465 = vpow2.f32 %v1122_v40  ;;  %1164 = vadd.xlane.f32.xlu1 %v1163_v30 }
 0x601   :  { %v1075_v33 = vpop.xlane.xlu2 %1074 }
 0x602   :  { %v2408_v25 = vsub.f32 %v2325_v13, %v1075_v33 }
 0x604   :  { %v1466_v54 = vpop.eup %1465  ;;  %v1124_v45 = vmul.f32 1.442695, %v2408_v25 }
 0x605   :  { %v1166_v28 = vsel %vm1033_vm1, %v1466_v54, 0.0 }
 0x606   :  { %1467 = vpow2.f32 %v1124_v45  ;;  %1167 = vadd.xlane.f32.xlu2 %v1166_v28 }
 0x609   :  { %v1078_v35 = vpop.xlane.xlu0 %1077 }
 0x60a   :  { %v2413_v47 = vsub.f32 %v2332_v1, %v1078_v35 }
 0x60c   :  { %v1468_v58 = vpop.eup %1467  ;;  %v1126_v62 = vmul.f32 1.442695, %v2413_v47 }
 0x60d   :  { %v1169_v22 = vsel %vm1033_vm1, %v1468_v58, 0.0 }
 0x60e   :  { %1469 = vpow2.f32 %v1126_v62  ;;  %1170 = vadd.xlane.f32.xlu0 %v1169_v22 }
 0x611   :  { %v1081_v13 = vpop.xlane.xlu1 %1080 }
 0x612   :  { %v2418_v19 = vsub.f32 %v2342_v26, %v1081_v13 }
 0x614   :  { %v1470_v17 = vpop.eup %1469  ;;  %v1128_v39 = vmul.f32 1.442695, %v2418_v19 }
 0x615   :  { %v1172_v31 = vsel %vm1033_vm1, %v1470_v17, 0.0 }
 0x616   :  { %1471 = vpow2.f32 %v1128_v39  ;;  %1173 = vadd.xlane.f32.xlu1 %v1172_v31 }
 0x619   :  { %v1132_v1 = vpop.xlane.xlu2 %1131 }
 0x61a   :  { %1473 = vlog2.f32 %v1132_v1 }
 0x61c   :  { %v1472_v23 = vpop.eup %1471 }
 0x61d   :  { %v1175_v7 = vsel %vm1033_vm1, %v1472_v23, 0.0 }
 0x61e   :  { %1176 = vadd.xlane.f32.xlu2 %v1175_v7 }
 0x620   :  { %v1474_v63 = vpop.eup %1473 }
 0x621   :  { %v1179_v43 = vmul.f32 0.6931472, %v1474_v63  ;;  %v1135_v24 = vpop.xlane.xlu0 %1134 }
 0x622   :  { %1475 = vlog2.f32 %v1135_v24 }
 0x623   :  { %v1210_v26 = vsub.f32 %v2339_v59, %v1179_v43 }
 0x625   :  { %1226 = vst.msk [vmem:[%s2511_s8] sm:$0xff] %vm1033_vm1, %v1210_v26 }
 0x628   :  { %v1476_v56 = vpop.eup %1475 }
 0x629   :  { %v1181_v50 = vmul.f32 0.6931472, %v1476_v56  ;;  %v1138_v20 = vpop.xlane.xlu1 %1137 }
 0x62a   :  { %1477 = vlog2.f32 %v1138_v20 }
 0x62b   :  { %v1211_v46 = vsub.f32 %v2348_v5, %v1181_v50 }
 0x62d   :  { %1227 = vst.msk [vmem:[%s2511_s8 + $0x8] sm:$0xff] %vm1033_vm1, %v1211_v46 }
 0x630   :  { %v1478_v41 = vpop.eup %1477 }
 0x631   :  { %v1183_v61 = vmul.f32 0.6931472, %v1478_v41  ;;  %v1141_v9 = vpop.xlane.xlu2 %1140 }
 0x632   :  { %1479 = vlog2.f32 %v1141_v9 }
 0x633   :  { %v1212_v59 = vsub.f32 %v2353_v52, %v1183_v61 }
 0x635   :  { %1228 = vst.msk [vmem:[%s2511_s8 + $0x10] sm:$0xff] %vm1033_vm1, %v1212_v59 }
 0x638   :  { %v1480_v60 = vpop.eup %1479 }
 0x639   :  { %v1185_v14 = vmul.f32 0.6931472, %v1480_v60  ;;  %v1144_v11 = vpop.xlane.xlu0 %1143 }
 0x63a   :  { %1481 = vlog2.f32 %v1144_v11 }
 0x63b   :  { %v1213_v5 = vsub.f32 %v2358_v57, %v1185_v14 }
 0x63d   :  { %1229 = vst.msk [vmem:[%s2511_s8 + $0x18] sm:$0xff] %vm1033_vm1, %v1213_v5 }
 0x640   :  { %v1482_v21 = vpop.eup %1481 }
 0x641   :  { %v1187_v6 = vmul.f32 0.6931472, %v1482_v21  ;;  %v1147_v15 = vpop.xlane.xlu1 %1146 }
 0x642   :  { %1483 = vlog2.f32 %v1147_v15 }
 0x643   :  { %v1214_v52 = vsub.f32 %v2363_v36, %v1187_v6 }
 0x645   :  { %1230 = vst.msk [vmem:[%s2511_s8 + $0x20] sm:$0xff] %vm1033_vm1, %v1214_v52 }
 0x648   :  { %v1484_v3 = vpop.eup %1483 }
 0x649   :  { %v1189_v51 = vmul.f32 0.6931472, %v1484_v3  ;;  %v1150_v2 = vpop.xlane.xlu2 %1149 }
 0x64a   :  { %1485 = vlog2.f32 %v1150_v2 }
 0x64b   :  { %v1215_v57 = vsub.f32 %v2368_v38, %v1189_v51 }
 0x64d   :  { %1231 = vst.msk [vmem:[%s2511_s8 + $0x28] sm:$0xff] %vm1033_vm1, %v1215_v57 }
 0x650   :  { %v1486_v18 = vpop.eup %1485 }
 0x651   :  { %v1191_v4 = vmul.f32 0.6931472, %v1486_v18  ;;  %v1153_v16 = vpop.xlane.xlu0 %1152 }
 0x652   :  { %1487 = vlog2.f32 %v1153_v16 }
 0x653   :  { %v1216_v36 = vsub.f32 %v2373_v48, %v1191_v4 }
 0x655   :  { %1232 = vst.msk [vmem:[%s2511_s8 + $0x30] sm:$0xff] %vm1033_vm1, %v1216_v36 }
 0x658   :  { %v1488_v34 = vpop.eup %1487 }
 0x659   :  { %v1193_v0 = vmul.f32 0.6931472, %v1488_v34  ;;  %v1156_v29 = vpop.xlane.xlu1 %1155 }
 0x65a   :  { %1489 = vlog2.f32 %v1156_v29 }
 0x65b   :  { %v1217_v38 = vsub.f32 %v2378_v55, %v1193_v0 }
 0x65d   :  { %1233 = vst.msk [vmem:[%s2511_s8 + $0x38] sm:$0xff] %vm1033_vm1, %v1217_v38 }
 0x660   :  { %v1490_v42 = vpop.eup %1489 }
 0x661   :  { %v1195_v8 = vmul.f32 0.6931472, %v1490_v42  ;;  %v1159_v44 = vpop.xlane.xlu2 %1158 }
 0x662   :  { %1491 = vlog2.f32 %v1159_v44 }
 0x663   :  { %v1218_v48 = vsub.f32 %v2383_v32, %v1195_v8 }
 0x665   :  { %1234 = vst.msk [vmem:[%s2511_s8 + $0x40] sm:$0xff] %vm1033_vm1, %v1218_v48 }
 0x668   :  { %v1492_v53 = vpop.eup %1491 }
 0x669   :  { %v1197_v49 = vmul.f32 0.6931472, %v1492_v53  ;;  %v1162_v40 = vpop.xlane.xlu0 %1161 }
 0x66a   :  { %1493 = vlog2.f32 %v1162_v40 }
 0x66b   :  { %v1219_v55 = vsub.f32 %v2388_v10, %v1197_v49 }
 0x66d   :  { %1235 = vst.msk [vmem:[%s2511_s8 + $0x48] sm:$0xff] %vm1033_vm1, %v1219_v55 }
 0x670   :  { %v1494_v30 = vpop.eup %1493 }
 0x671   :  { %v1199_v33 = vmul.f32 0.6931472, %v1494_v30  ;;  %v1165_v54 = vpop.xlane.xlu1 %1164 }
 0x672   :  { %1495 = vlog2.f32 %v1165_v54 }
 0x673   :  { %v1220_v32 = vsub.f32 %v2393_v37, %v1199_v33 }
 0x675   :  { %1236 = vst.msk [vmem:[%s2511_s8 + $0x50] sm:$0xff] %vm1033_vm1, %v1220_v32 }
 0x678   :  { %v1496_v45 = vpop.eup %1495 }
 0x679   :  { %v1201_v28 = vmul.f32 0.6931472, %v1496_v45  ;;  %v1168_v35 = vpop.xlane.xlu2 %1167 }
 0x67a   :  { %1497 = vlog2.f32 %v1168_v35 }
 0x67b   :  { %v1221_v10 = vsub.f32 %v2398_v27, %v1201_v28 }
 0x67d   :  { %1237 = vst.msk [vmem:[%s2511_s8 + $0x58] sm:$0xff] %vm1033_vm1, %v1221_v10 }
 0x680   :  { %v1498_v58 = vpop.eup %1497 }
 0x681   :  { %v1203_v62 = vmul.f32 0.6931472, %v1498_v58  ;;  %v1171_v22 = vpop.xlane.xlu0 %1170 }
 0x682   :  { %1499 = vlog2.f32 %v1171_v22 }
 0x683   :  { %v1222_v37 = vsub.f32 %v2403_v12, %v1203_v62 }
 0x685   :  { %1238 = vst.msk [vmem:[%s2511_s8 + $0x60] sm:$0xff] %vm1033_vm1, %v1222_v37 }
 0x688   :  { %v1500_v13 = vpop.eup %1499 }
 0x689   :  { %v1205_v17 = vmul.f32 0.6931472, %v1500_v13  ;;  %v1174_v39 = vpop.xlane.xlu1 %1173 }
 0x68a   :  { %1501 = vlog2.f32 %v1174_v39 }
 0x68b   :  { %v1223_v27 = vsub.f32 %v2408_v25, %v1205_v17 }
 0x68d   :  { %1239 = vst.msk [vmem:[%s2511_s8 + $0x68] sm:$0xff] %vm1033_vm1, %v1223_v27 }
 0x690   :  { %v1502_v31 = vpop.eup %1501 }
 0x691   :  { %v1207_v1 = vmul.f32 0.6931472, %v1502_v31  ;;  %v1177_v23 = vpop.xlane.xlu2 %1176 }
 0x692   :  { %1503 = vlog2.f32 %v1177_v23 }
 0x693   :  { %v1224_v12 = vsub.f32 %v2413_v47, %v1207_v1 }
 0x695   :  { %1240 = vst.msk [vmem:[%s2511_s8 + $0x70] sm:$0xff] %vm1033_vm1, %v1224_v12 }
 0x698   :  { %v1504_v7 = vpop.eup %1503 }
 0x699   :  { %v1209_v63 = vmul.f32 0.6931472, %v1504_v7 }
 0x69b   :  { %v1225_v25 = vsub.f32 %v2418_v19, %v1209_v63 }
 0x69d   :  { %1241 = vst.msk [vmem:[%s2511_s8 + $0x78] sm:$0xff] %vm1033_vm1, %v1225_v25 }

</bundles_post_ra>
